<compile_context>
chip_gen: v5e
topology: v5e:2x2
jax: 0.10.0
libtpu: 0.0.40
codegen_flags: <defaults>
</compile_context>

<pallas_src>
import math
import functools

import jax
import jax.numpy as jnp
from jax import lax
from jax.experimental import pallas as pl
from jax.experimental.pallas import tpu as pltpu


# ----------------------------- slab layout plan -----------------------------

def _round8(n):
    return -(-n // 8) * 8


def _slab_plan(cfg):
    """Static row offsets of every weight matrix / parameter vector inside the
    two packed slabs (shared by prepare_params and the kernel)."""
    D, F = cfg["ninp"], cfg["feature_size"]
    nhid, O, L = cfg["nhid"], cfg["output_size"], cfg["nlayers"]
    wcol = max(3 * D, nhid, D, O)

    woff, row = {}, 0

    def add_w(key, rows):
        nonlocal row
        woff[key] = row
        row += _round8(rows)          # every matrix starts on an 8-aligned row

    add_w("enc", F)
    for l in range(L):
        add_w(("wqkv", l), D)
        add_w(("wo", l), D)
        add_w(("w1", l), D)
        add_w(("w2", l), nhid)
    add_w("dec_x", D)
    if cfg["condition_decoder"]:
        add_w("dec_s", F)

    voff, vrow = {}, 0

    def add_v(key):
        nonlocal vrow
        voff[key] = vrow
        vrow += 1

    for l in range(L):
        for nm in ("bqkv", "bo", "ln1_g", "ln1_b", "b1", "b2", "ln2_g", "ln2_b"):
            add_v((nm, l))
    if cfg["transformer_norm"]:
        add_v("fin_g")
        add_v("fin_b")
    add_v("dec_b")

    return {"wcol": wcol, "w": woff, "w_rows": _round8(row),
            "v": voff, "v_rows": _round8(vrow)}


# ------------------------------ fused kernel -------------------------------

def _fwd_kernel(src_ref, pos_ref, bias_ref, wm_ref, vb_ref, o_ref, *,
                N, B, F, D, H, nhid, O, L, plan, scale, eps,
                transformer_norm, condition_decoder):
    f32 = jnp.float32
    hd = D // H
    woff, voff = plan["w"], plan["v"]

    def mat(key, rows, cols):                 # static slab window -> load
        off = woff[key]
        return wm_ref[off:off + rows, 0:cols]

    def vec(key, n):                          # (1, n) row, broadcasts over M
        r = voff[key]
        return vb_ref[r:r + 1, 0:n]

    def layer_norm(y, gk, bk):
        mu = jnp.mean(y, axis=-1, keepdims=True)
        yc = y - mu
        var = jnp.mean(yc * yc, axis=-1, keepdims=True)
        return yc * lax.rsqrt(var + eps) * vec(gk, D) + vec(bk, D)

    # Batch-major (B*N, F) activation slab (free lane slices of the (N, B*F) input).
    src2d = src_ref[...]                                              # (N, B*F)
    src_all = jnp.concatenate(
        [src2d[:, b * F:(b + 1) * F] for b in range(B)], axis=0)      # (B*N, F)
    pos_all = jnp.concatenate([pos_ref[...]] * B, axis=0)             # (B*N, D)

    # Input encoder: weights pre-scaled by sqrt(ninp), bias folded into pos.
    x = jnp.dot(src_all, mat("enc", F, D), preferred_element_type=f32) + pos_all

    for l in range(L):
        # ---- fused QKV projection: one (B*N, D) @ (D, 3D) matmul
        qkv = (jnp.dot(x, mat(("wqkv", l), D, 3 * D), preferred_element_type=f32)
               + vec(("bqkv", l), 3 * D))                             # (B*N, 3D)

        attn_rows = []
        for b in range(B):
            qkv_b = qkv[b * N:(b + 1) * N]                            # (N, 3D)
            heads = []
            for h in range(H):
                q = qkv_b[:, h * hd:(h + 1) * hd] * scale
                k = qkv_b[:, D + h * hd:D + (h + 1) * hd]
                v = qkv_b[:, 2 * D + h * hd:2 * D + (h + 1) * hd]
                s = lax.dot_general(q, k, (((1,), (1,)), ((), ())),
                                    preferred_element_type=f32)       # (N, N)
                if l == 0:                       # relational bias, layer 0 only
                    s = s + bias_ref[h]
                s = s - jnp.max(s, axis=-1, keepdims=True)
                p = jnp.exp(s)
                p = p / jnp.sum(p, axis=-1, keepdims=True)            # exact softmax
                heads.append(jnp.dot(p, v, preferred_element_type=f32))
            attn_rows.append(jnp.concatenate(heads, axis=1))          # (N, D)
        attn = jnp.concatenate(attn_rows, axis=0)                     # (B*N, D)

        # ---- fused output projection: one (B*N, D) @ (D, D) matmul
        attn = (jnp.dot(attn, mat(("wo", l), D, D), preferred_element_type=f32)
                + vec(("bo", l), D))
        x = layer_norm(x + attn, ("ln1_g", l), ("ln1_b", l))

        # ---- feed-forward, batch folded into M
        hmid = jnp.maximum(
            jnp.dot(x, mat(("w1", l), D, nhid), preferred_element_type=f32)
            + vec(("b1", l), nhid), 0.0)
        ffo = (jnp.dot(hmid, mat(("w2", l), nhid, D), preferred_element_type=f32)
               + vec(("b2", l), D))
        x = layer_norm(x + ffo, ("ln2_g", l), ("ln2_b", l))

    if transformer_norm:
        x = layer_norm(x, "fin_g", "fin_b")

    # Decoder on concat([x, src]) realised as split-weight matmuls (no concat).
    out = jnp.dot(x, mat("dec_x", D, O), preferred_element_type=f32) + vec("dec_b", O)
    if condition_decoder:
        out = out + jnp.dot(src_all, mat("dec_s", F, O), preferred_element_type=f32)

    # Single lane-dense (N, B*O) store; wrapper reshape back to (N, B, O) is free.
    o_ref[...] = jnp.concatenate(
        [out[b * N:(b + 1) * N, :] for b in range(B)], axis=1)


# ------------------------------ model forward ------------------------------

def transformer_model_forward(kp, src, traversals, rel, *, cfg):
    N, B, F = src.shape
    D, H, O = cfg["ninp"], cfg["nhead"], cfg["output_size"]
    plan = _slab_plan(cfg)

    # TODO(synk): ConcatPositionalEmbedding's table gather is data-dependent and
    # stays as a jnp gather in the wrapper (no BlockSpec expression for it).
    pos = jnp.concatenate(
        [kp["pos_emb"][i][traversals[i]] for i in range(cfg["num_positions"])],
        axis=1) + kp["pos_shift"]                                    # (N, D)

    # Batch-invariant relational attention bias, hoisted out of the kernel.
    bias = (jnp.einsum("hr,ijr->hij", kp["rel_w"], rel)
            + kp["rel_b"][:, None, None])                            # (H, N, N)

    src2d = src.reshape(N, B * F)                                    # free reshape

    kern = functools.partial(
        _fwd_kernel,
        N=N, B=B, F=F, D=D, H=H, nhid=cfg["nhid"], O=O, L=cfg["nlayers"],
        plan=plan, scale=1.0 / math.sqrt(D // H), eps=1e-5,
        transformer_norm=cfg["transformer_norm"],
        condition_decoder=cfg["condition_decoder"])

    out2d = pl.pallas_call(
        kern,
        out_shape=jax.ShapeDtypeStruct((N, B * O), jnp.float32),
        in_specs=[pl.BlockSpec(memory_space=pltpu.MemorySpace.VMEM)
                  for _ in range(5)],
        out_specs=pl.BlockSpec(memory_space=pltpu.MemorySpace.VMEM),
    )(src2d, pos, bias, kp["w_slab"], kp["v_slab"])
    return out2d.reshape(N, B, O)                                    # free reshape


# ------------------------- one-time parameter prep --------------------------

def prepare_params(params, cfg):
    """PyTorch-layout params -> two packed, kernel-ready slabs (done ONCE)."""
    D = cfg["ninp"]
    plan = _slab_plan(cfg)
    sqrt_d = math.sqrt(D)

    w_slab = jnp.zeros((plan["w_rows"], plan["wcol"]), jnp.float32)
    v_slab = jnp.zeros((plan["v_rows"], plan["wcol"]), jnp.float32)

    def put_w(key, m):
        nonlocal w_slab
        r, c = m.shape
        off = plan["w"][key]
        w_slab = w_slab.at[off:off + r, 0:c].set(m)

    def put_v(key, v):
        nonlocal v_slab
        v_slab = v_slab.at[plan["v"][key], 0:v.shape[0]].set(v)

    put_w("enc", params["enc_w"].T * sqrt_d)            # (F, D), pre-scaled
    for l, lp in enumerate(params["layers"]):
        put_w(("wqkv", l), lp["in_proj_w"].T)           # (D, 3D)
        put_w(("wo", l), lp["out_proj_w"].T)            # (D, D)
        put_w(("w1", l), lp["ffn1_w"].T)                # (D, nhid)
        put_w(("w2", l), lp["ffn2_w"].T)                # (nhid, D)
        put_v(("bqkv", l), lp["in_proj_b"])
        put_v(("bo", l), lp["out_proj_b"])
        put_v(("ln1_g", l), lp["ln1_g"])
        put_v(("ln1_b", l), lp["ln1_b"])
        put_v(("b1", l), lp["ffn1_b"])
        put_v(("b2", l), lp["ffn2_b"])
        put_v(("ln2_g", l), lp["ln2_g"])
        put_v(("ln2_b", l), lp["ln2_b"])

    dec_wt = params["dec_w"].T                          # (Din, O)
    if cfg["condition_decoder"]:
        put_w("dec_x", dec_wt[:D])
        put_w("dec_s", dec_wt[D:])
    else:
        put_w("dec_x", dec_wt)
    if cfg["transformer_norm"]:
        put_v("fin_g", params["final_ln_g"])
        put_v("fin_b", params["final_ln_b"])
    put_v("dec_b", params["dec_b"])

    return {
        "pos_emb": params["pos_emb"],
        "pos_shift": params["enc_b"] * sqrt_d,          # encoder bias, pre-scaled
        "rel_w": params["rel_w"],
        "rel_b": params["rel_b"],
        "w_slab": w_slab,
        "v_slab": v_slab,
    }


# --------------------------- pure-JAX reference ----------------------------

def reference_forward(params, src, traversals, rel, cfg):
    """Direct re-implementation of the PyTorch module (eval mode), f32."""
    N, B, F = src.shape
    D, H = cfg["ninp"], cfg["nhead"]
    hd = D // H
    eps = 1e-5
    hi = jax.lax.Precision.HIGHEST

    def layer_norm(y, g, b):
        mu = y.mean(-1, keepdims=True)
        var = ((y - mu) ** 2).mean(-1, keepdims=True)
        return (y - mu) / jnp.sqrt(var + eps) * g + b

    x = (jnp.einsum("nbf,df->nbd", src, params["enc_w"], precision=hi)
         + params["enc_b"]) * math.sqrt(D)
    pos = jnp.concatenate(
        [params["pos_emb"][i][traversals[i]] for i in range(cfg["num_positions"])],
        axis=1)
    x = x + pos[:, None, :]
    rel_enc = jnp.einsum("ijr,hr->ijh", rel, params["rel_w"], precision=hi) \
        + params["rel_b"]
    bias = jnp.transpose(rel_enc, (2, 0, 1))[None]       # (1, H, N, N)
    scale = 1.0 / math.sqrt(hd)

    for li, lp in enumerate(params["layers"]):
        qkv = jnp.einsum("nbd,ed->nbe", x, lp["in_proj_w"], precision=hi) \
            + lp["in_proj_b"]
        q = qkv[..., :D].reshape(N, B, H, hd)
        k = qkv[..., D:2 * D].reshape(N, B, H, hd)
        v = qkv[..., 2 * D:].reshape(N, B, H, hd)
        s = jnp.einsum("ibhd,jbhd->bhij", q, k, precision=hi) * scale
        if li == 0:
            s = s + bias
        p = jax.nn.softmax(s, axis=-1)
        o = jnp.einsum("bhij,jbhd->ibhd", p, v, precision=hi).reshape(N, B, D)
        attn = jnp.einsum("nbd,ed->nbe", o, lp["out_proj_w"], precision=hi) \
            + lp["out_proj_b"]
        x = layer_norm(x + attn, lp["ln1_g"], lp["ln1_b"])
        h1 = jnp.maximum(
            jnp.einsum("nbd,hd->nbh", x, lp["ffn1_w"], precision=hi)
            + lp["ffn1_b"], 0.0)
        ff = jnp.einsum("nbh,dh->nbd", h1, lp["ffn2_w"], precision=hi) \
            + lp["ffn2_b"]
        x = layer_norm(x + ff, lp["ln2_g"], lp["ln2_b"])

    if cfg["transformer_norm"]:
        x = layer_norm(x, params["final_ln_g"], params["final_ln_b"])
    if cfg["condition_decoder"]:
        x = jnp.concatenate([x, src], axis=2)
    return jnp.einsum("nbk,ok->nbo", x, params["dec_w"], precision=hi) \
        + params["dec_b"]


# ---------------------------- deterministic init ---------------------------

def init_params(key, cfg):
    D, H, F = cfg["ninp"], cfg["nhead"], cfg["feature_size"]
    nhid, L = cfg["nhid"], cfg["nlayers"]
    num_pos, max_node, R = cfg["num_positions"], cfg["max_node"], cfg["rel_size"]
    O = cfg["output_size"]
    unit_d, rem = D // num_pos, D % num_pos

    keys = iter(jax.random.split(key, 64))

    def u(shape, s=0.1):
        return jax.random.uniform(next(keys), shape, jnp.float32, -s, s)

    dec_in = D + F if cfg["condition_decoder"] else D
    params = {
        "enc_w": u((D, F)),                       # encoder.weight ~ U(-0.1, 0.1)
        "enc_b": u((D,), 0.05),
        "pos_emb": [u((max_node, unit_d + (rem if i == num_pos - 1 else 0)), 0.5)
                    for i in range(num_pos)],
        "rel_w": u((H, R), 0.3),
        "rel_b": u((H,), 0.1),
        "dec_w": u((O, dec_in)),                  # decoder.weight ~ U(-0.1, 0.1)
        "dec_b": jnp.zeros((O,), jnp.float32),    # decoder.bias zeroed
        "final_ln_g": jnp.ones((D,), jnp.float32),
        "final_ln_b": jnp.zeros((D,), jnp.float32),
        "layers": [],
    }
    for _ in range(L):
        params["layers"].append({
            "in_proj_w": u((3 * D, D)),
            "in_proj_b": u((3 * D,), 0.05),
            "out_proj_w": u((D, D)),
            "out_proj_b": u((D,), 0.05),
            "ffn1_w": u((nhid, D)),
            "ffn1_b": u((nhid,), 0.05),
            "ffn2_w": u((D, nhid)),
            "ffn2_b": u((D,), 0.05),
            "ln1_g": jnp.ones((D,), jnp.float32),
            "ln1_b": jnp.zeros((D,), jnp.float32),
            "ln2_g": jnp.ones((D,), jnp.float32),
            "ln2_b": jnp.zeros((D,), jnp.float32),
        })
    return params


# ----------------------------------- main -----------------------------------

if __name__ == "__main__":
    cfg = dict(feature_size=10, output_size=6, ninp=32, nhead=4, nhid=64,
               nlayers=2, num_positions=2, rel_size=3, max_node=15,
               condition_decoder=True, transformer_norm=True)
    N, B = 8, 2

    key = jax.random.PRNGKey(0)
    k_src, k_rel, k_trav, k_params = jax.random.split(key, 4)
    src = jax.random.normal(k_src, (N, B, cfg["feature_size"]), jnp.float32)
    rel = jax.random.normal(k_rel, (N, N, cfg["rel_size"]), jnp.float32)
    traversals = jax.random.randint(k_trav, (cfg["num_positions"], N),
                                    0, cfg["max_node"], dtype=jnp.int32)

    params = init_params(k_params, cfg)
    kparams = prepare_params(params, cfg)   # weights packed into slabs once

    fwd = jax.jit(functools.partial(transformer_model_forward, cfg=cfg))
    out = fwd(kparams, src, traversals, rel)
    jax.block_until_ready(out)

    assert out.shape == (N, B, cfg["output_size"])
    assert bool(jnp.all(jnp.isfinite(out)))

    # Sanity check vs. a pure-JAX f32 reference of the PyTorch forward.
    # Loose tolerance accommodates possible bf16 MXU passes on older chips.
    ref = reference_forward(params, src, traversals, rel, cfg)
    max_diff = float(jnp.max(jnp.abs(out - ref)))
    assert max_diff < 3e-2, f"kernel/reference mismatch, max abs diff {max_diff}"

    print("KERNEL_OK")
</pallas_src>

<mosaic_0001>
module attributes {stable_mosaic.version = 11 : i64} {
  func.func @_fwd_kernel(%arg0: memref<8x20xf32, #tpu.memory_space<vmem>>, %arg1: memref<8x32xf32, #tpu.memory_space<vmem>>, %arg2: memref<4x8x8xf32, #tpu.memory_space<vmem>>, %arg3: memref<384x96xf32, #tpu.memory_space<vmem>>, %arg4: memref<24x96xf32, #tpu.memory_space<vmem>>, %arg5: memref<8x12xf32, #tpu.memory_space<vmem>>) attributes {dimension_semantics = [], scalar_prefetch = 0 : i64, scratch_operands = 0 : i64, tpu.core_type = #tpu.core_type<tc>} {
    %c0 = arith.constant 0 : index
    %c0_0 = arith.constant 0 : index
    %0 = vector.load %arg0[%c0, %c0_0] : memref<8x20xf32, #tpu.memory_space<vmem>>, vector<8x20xf32>
    %1 = vector.extract_strided_slice %0 {offsets = [0, 0], sizes = [8, 10], strides = [1, 1]} : vector<8x20xf32> to vector<8x10xf32>
    %2 = vector.extract_strided_slice %0 {offsets = [0, 10], sizes = [8, 10], strides = [1, 1]} : vector<8x20xf32> to vector<8x10xf32>
    %3 = tpu.concatenate %1, %2 in 0 : vector<8x10xf32>, vector<8x10xf32> -> vector<16x10xf32>
    %c0_1 = arith.constant 0 : index
    %c0_2 = arith.constant 0 : index
    %4 = vector.load %arg1[%c0_1, %c0_2] : memref<8x32xf32, #tpu.memory_space<vmem>>, vector<8x32xf32>
    %5 = tpu.concatenate %4, %4 in 0 : vector<8x32xf32>, vector<8x32xf32> -> vector<16x32xf32>
    %c0_3 = arith.constant 0 : index
    %c0_4 = arith.constant 0 : index
    %6 = vector.load %arg3[%c0_3, %c0_4] : memref<384x96xf32, #tpu.memory_space<vmem>>, vector<10x32xf32>
    %cst = arith.constant dense<0.000000e+00> : vector<16x32xf32>
    %7 = tpu.matmul %3, %6, %cst {dimension_numbers = #tpu.dot_dimension_numbers<[1], [0], [0], [1], [0, 0, 1, 1], [], []>} : vector<16x10xf32>, vector<10x32xf32>, vector<16x32xf32> -> vector<16x32xf32>
    %8 = arith.addf %7, %5 : vector<16x32xf32>
    %c16 = arith.constant 16 : index
    %c0_5 = arith.constant 0 : index
    %9 = vector.load %arg3[%c16, %c0_5] : memref<384x96xf32, #tpu.memory_space<vmem>>, vector<32x96xf32>
    %cst_6 = arith.constant dense<0.000000e+00> : vector<16x96xf32>
    %10 = tpu.matmul %8, %9, %cst_6 {dimension_numbers = #tpu.dot_dimension_numbers<[1], [0], [0], [1], [0, 0, 1, 1], [], []>} : vector<16x32xf32>, vector<32x96xf32>, vector<16x96xf32> -> vector<16x96xf32>
    %c0_7 = arith.constant 0 : index
    %c0_8 = arith.constant 0 : index
    %11 = vector.load %arg4[%c0_7, %c0_8] : memref<24x96xf32, #tpu.memory_space<vmem>>, vector<1x96xf32>
    %12 = vector.broadcast %11 : vector<1x96xf32> to vector<16x96xf32>
    %13 = arith.addf %10, %12 : vector<16x96xf32>
    %14 = vector.extract_strided_slice %13 {offsets = [0, 0], sizes = [8, 96], strides = [1, 1]} : vector<16x96xf32> to vector<8x96xf32>
    %15 = vector.extract_strided_slice %14 {offsets = [0, 0], sizes = [8, 8], strides = [1, 1]} : vector<8x96xf32> to vector<8x8xf32>
    %cst_9 = arith.constant 0.353553385 : f32
    %16 = vector.broadcast %cst_9 : f32 to vector<8x8xf32>
    %17 = arith.mulf %15, %16 : vector<8x8xf32>
    %18 = vector.extract_strided_slice %14 {offsets = [0, 32], sizes = [8, 8], strides = [1, 1]} : vector<8x96xf32> to vector<8x8xf32>
    %19 = vector.extract_strided_slice %14 {offsets = [0, 64], sizes = [8, 8], strides = [1, 1]} : vector<8x96xf32> to vector<8x8xf32>
    %cst_10 = arith.constant dense<0.000000e+00> : vector<8x8xf32>
    %20 = tpu.matmul %17, %18, %cst_10 {dimension_numbers = #tpu.dot_dimension_numbers<[1], [1], [0], [0], [0, 0, 1, 0], [], []>} : vector<8x8xf32>, vector<8x8xf32>, vector<8x8xf32> -> vector<8x8xf32>
    %c0_11 = arith.constant 0 : index
    %c0_12 = arith.constant 0 : index
    %c0_13 = arith.constant 0 : index
    %21 = vector.load %arg2[%c0_11, %c0_12, %c0_13] : memref<4x8x8xf32, #tpu.memory_space<vmem>>, vector<1x8x8xf32>
    %22 = vector.shape_cast %21 : vector<1x8x8xf32> to vector<8x8xf32>
    %23 = arith.addf %20, %22 : vector<8x8xf32>
    %cst_14 = arith.constant dense<0xFF800000> : vector<8xf32>
    %24 = vector.multi_reduction <maximumf>, %23, %cst_14 [1] : vector<8x8xf32> to vector<8xf32>
    %25 = vector.shape_cast %24 : vector<8xf32> to vector<8x1xf32>
    %26 = vector.broadcast %25 : vector<8x1xf32> to vector<8x8xf32>
    %27 = arith.subf %23, %26 : vector<8x8xf32>
    %28 = math.exp %27 : vector<8x8xf32>
    %cst_15 = arith.constant dense<0.000000e+00> : vector<8xf32>
    %29 = vector.multi_reduction <add>, %28, %cst_15 [1] : vector<8x8xf32> to vector<8xf32>
    %30 = vector.shape_cast %29 : vector<8xf32> to vector<8x1xf32>
    %31 = vector.broadcast %30 : vector<8x1xf32> to vector<8x8xf32>
    %32 = arith.divf %28, %31 : vector<8x8xf32>
    %cst_16 = arith.constant dense<0.000000e+00> : vector<8x8xf32>
    %33 = tpu.matmul %32, %19, %cst_16 {dimension_numbers = #tpu.dot_dimension_numbers<[1], [0], [0], [1], [0, 0, 1, 1], [], []>} : vector<8x8xf32>, vector<8x8xf32>, vector<8x8xf32> -> vector<8x8xf32>
    %34 = vector.extract_strided_slice %14 {offsets = [0, 8], sizes = [8, 8], strides = [1, 1]} : vector<8x96xf32> to vector<8x8xf32>
    %cst_17 = arith.constant 0.353553385 : f32
    %35 = vector.broadcast %cst_17 : f32 to vector<8x8xf32>
    %36 = arith.mulf %34, %35 : vector<8x8xf32>
    %37 = vector.extract_strided_slice %14 {offsets = [0, 40], sizes = [8, 8], strides = [1, 1]} : vector<8x96xf32> to vector<8x8xf32>
    %38 = vector.extract_strided_slice %14 {offsets = [0, 72], sizes = [8, 8], strides = [1, 1]} : vector<8x96xf32> to vector<8x8xf32>
    %cst_18 = arith.constant dense<0.000000e+00> : vector<8x8xf32>
    %39 = tpu.matmul %36, %37, %cst_18 {dimension_numbers = #tpu.dot_dimension_numbers<[1], [1], [0], [0], [0, 0, 1, 0], [], []>} : vector<8x8xf32>, vector<8x8xf32>, vector<8x8xf32> -> vector<8x8xf32>
    %c1 = arith.constant 1 : index
    %c0_19 = arith.constant 0 : index
    %c0_20 = arith.constant 0 : index
    %40 = vector.load %arg2[%c1, %c0_19, %c0_20] : memref<4x8x8xf32, #tpu.memory_space<vmem>>, vector<1x8x8xf32>
    %41 = vector.shape_cast %40 : vector<1x8x8xf32> to vector<8x8xf32>
    %42 = arith.addf %39, %41 : vector<8x8xf32>
    %cst_21 = arith.constant dense<0xFF800000> : vector<8xf32>
    %43 = vector.multi_reduction <maximumf>, %42, %cst_21 [1] : vector<8x8xf32> to vector<8xf32>
    %44 = vector.shape_cast %43 : vector<8xf32> to vector<8x1xf32>
    %45 = vector.broadcast %44 : vector<8x1xf32> to vector<8x8xf32>
    %46 = arith.subf %42, %45 : vector<8x8xf32>
    %47 = math.exp %46 : vector<8x8xf32>
    %cst_22 = arith.constant dense<0.000000e+00> : vector<8xf32>
    %48 = vector.multi_reduction <add>, %47, %cst_22 [1] : vector<8x8xf32> to vector<8xf32>
    %49 = vector.shape_cast %48 : vector<8xf32> to vector<8x1xf32>
    %50 = vector.broadcast %49 : vector<8x1xf32> to vector<8x8xf32>
    %51 = arith.divf %47, %50 : vector<8x8xf32>
    %cst_23 = arith.constant dense<0.000000e+00> : vector<8x8xf32>
    %52 = tpu.matmul %51, %38, %cst_23 {dimension_numbers = #tpu.dot_dimension_numbers<[1], [0], [0], [1], [0, 0, 1, 1], [], []>} : vector<8x8xf32>, vector<8x8xf32>, vector<8x8xf32> -> vector<8x8xf32>
    %53 = vector.extract_strided_slice %14 {offsets = [0, 16], sizes = [8, 8], strides = [1, 1]} : vector<8x96xf32> to vector<8x8xf32>
    %cst_24 = arith.constant 0.353553385 : f32
    %54 = vector.broadcast %cst_24 : f32 to vector<8x8xf32>
    %55 = arith.mulf %53, %54 : vector<8x8xf32>
    %56 = vector.extract_strided_slice %14 {offsets = [0, 48], sizes = [8, 8], strides = [1, 1]} : vector<8x96xf32> to vector<8x8xf32>
    %57 = vector.extract_strided_slice %14 {offsets = [0, 80], sizes = [8, 8], strides = [1, 1]} : vector<8x96xf32> to vector<8x8xf32>
    %cst_25 = arith.constant dense<0.000000e+00> : vector<8x8xf32>
    %58 = tpu.matmul %55, %56, %cst_25 {dimension_numbers = #tpu.dot_dimension_numbers<[1], [1], [0], [0], [0, 0, 1, 0], [], []>} : vector<8x8xf32>, vector<8x8xf32>, vector<8x8xf32> -> vector<8x8xf32>
    %c2 = arith.constant 2 : index
    %c0_26 = arith.constant 0 : index
    %c0_27 = arith.constant 0 : index
    %59 = vector.load %arg2[%c2, %c0_26, %c0_27] : memref<4x8x8xf32, #tpu.memory_space<vmem>>, vector<1x8x8xf32>
    %60 = vector.shape_cast %59 : vector<1x8x8xf32> to vector<8x8xf32>
    %61 = arith.addf %58, %60 : vector<8x8xf32>
    %cst_28 = arith.constant dense<0xFF800000> : vector<8xf32>
    %62 = vector.multi_reduction <maximumf>, %61, %cst_28 [1] : vector<8x8xf32> to vector<8xf32>
    %63 = vector.shape_cast %62 : vector<8xf32> to vector<8x1xf32>
    %64 = vector.broadcast %63 : vector<8x1xf32> to vector<8x8xf32>
    %65 = arith.subf %61, %64 : vector<8x8xf32>
    %66 = math.exp %65 : vector<8x8xf32>
    %cst_29 = arith.constant dense<0.000000e+00> : vector<8xf32>
    %67 = vector.multi_reduction <add>, %66, %cst_29 [1] : vector<8x8xf32> to vector<8xf32>
    %68 = vector.shape_cast %67 : vector<8xf32> to vector<8x1xf32>
    %69 = vector.broadcast %68 : vector<8x1xf32> to vector<8x8xf32>
    %70 = arith.divf %66, %69 : vector<8x8xf32>
    %cst_30 = arith.constant dense<0.000000e+00> : vector<8x8xf32>
    %71 = tpu.matmul %70, %57, %cst_30 {dimension_numbers = #tpu.dot_dimension_numbers<[1], [0], [0], [1], [0, 0, 1, 1], [], []>} : vector<8x8xf32>, vector<8x8xf32>, vector<8x8xf32> -> vector<8x8xf32>
    %72 = vector.extract_strided_slice %14 {offsets = [0, 24], sizes = [8, 8], strides = [1, 1]} : vector<8x96xf32> to vector<8x8xf32>
    %cst_31 = arith.constant 0.353553385 : f32
    %73 = vector.broadcast %cst_31 : f32 to vector<8x8xf32>
    %74 = arith.mulf %72, %73 : vector<8x8xf32>
    %75 = vector.extract_strided_slice %14 {offsets = [0, 56], sizes = [8, 8], strides = [1, 1]} : vector<8x96xf32> to vector<8x8xf32>
    %76 = vector.extract_strided_slice %14 {offsets = [0, 88], sizes = [8, 8], strides = [1, 1]} : vector<8x96xf32> to vector<8x8xf32>
    %cst_32 = arith.constant dense<0.000000e+00> : vector<8x8xf32>
    %77 = tpu.matmul %74, %75, %cst_32 {dimension_numbers = #tpu.dot_dimension_numbers<[1], [1], [0], [0], [0, 0, 1, 0], [], []>} : vector<8x8xf32>, vector<8x8xf32>, vector<8x8xf32> -> vector<8x8xf32>
    %c3 = arith.constant 3 : index
    %c0_33 = arith.constant 0 : index
    %c0_34 = arith.constant 0 : index
    %78 = vector.load %arg2[%c3, %c0_33, %c0_34] : memref<4x8x8xf32, #tpu.memory_space<vmem>>, vector<1x8x8xf32>
    %79 = vector.shape_cast %78 : vector<1x8x8xf32> to vector<8x8xf32>
    %80 = arith.addf %77, %79 : vector<8x8xf32>
    %cst_35 = arith.constant dense<0xFF800000> : vector<8xf32>
    %81 = vector.multi_reduction <maximumf>, %80, %cst_35 [1] : vector<8x8xf32> to vector<8xf32>
    %82 = vector.shape_cast %81 : vector<8xf32> to vector<8x1xf32>
    %83 = vector.broadcast %82 : vector<8x1xf32> to vector<8x8xf32>
    %84 = arith.subf %80, %83 : vector<8x8xf32>
    %85 = math.exp %84 : vector<8x8xf32>
    %cst_36 = arith.constant dense<0.000000e+00> : vector<8xf32>
    %86 = vector.multi_reduction <add>, %85, %cst_36 [1] : vector<8x8xf32> to vector<8xf32>
    %87 = vector.shape_cast %86 : vector<8xf32> to vector<8x1xf32>
    %88 = vector.broadcast %87 : vector<8x1xf32> to vector<8x8xf32>
    %89 = arith.divf %85, %88 : vector<8x8xf32>
    %cst_37 = arith.constant dense<0.000000e+00> : vector<8x8xf32>
    %90 = tpu.matmul %89, %76, %cst_37 {dimension_numbers = #tpu.dot_dimension_numbers<[1], [0], [0], [1], [0, 0, 1, 1], [], []>} : vector<8x8xf32>, vector<8x8xf32>, vector<8x8xf32> -> vector<8x8xf32>
    %91 = tpu.concatenate %33, %52, %71, %90 in 1 : vector<8x8xf32>, vector<8x8xf32>, vector<8x8xf32>, vector<8x8xf32> -> vector<8x32xf32>
    %92 = vector.extract_strided_slice %13 {offsets = [8, 0], sizes = [8, 96], strides = [1, 1]} : vector<16x96xf32> to vector<8x96xf32>
    %93 = vector.extract_strided_slice %92 {offsets = [0, 0], sizes = [8, 8], strides = [1, 1]} : vector<8x96xf32> to vector<8x8xf32>
    %cst_38 = arith.constant 0.353553385 : f32
    %94 = vector.broadcast %cst_38 : f32 to vector<8x8xf32>
    %95 = arith.mulf %93, %94 : vector<8x8xf32>
    %96 = vector.extract_strided_slice %92 {offsets = [0, 32], sizes = [8, 8], strides = [1, 1]} : vector<8x96xf32> to vector<8x8xf32>
    %97 = vector.extract_strided_slice %92 {offsets = [0, 64], sizes = [8, 8], strides = [1, 1]} : vector<8x96xf32> to vector<8x8xf32>
    %cst_39 = arith.constant dense<0.000000e+00> : vector<8x8xf32>
    %98 = tpu.matmul %95, %96, %cst_39 {dimension_numbers = #tpu.dot_dimension_numbers<[1], [1], [0], [0], [0, 0, 1, 0], [], []>} : vector<8x8xf32>, vector<8x8xf32>, vector<8x8xf32> -> vector<8x8xf32>
    %c0_40 = arith.constant 0 : index
    %c0_41 = arith.constant 0 : index
    %c0_42 = arith.constant 0 : index
    %99 = vector.load %arg2[%c0_40, %c0_41, %c0_42] : memref<4x8x8xf32, #tpu.memory_space<vmem>>, vector<1x8x8xf32>
    %100 = vector.shape_cast %99 : vector<1x8x8xf32> to vector<8x8xf32>
    %101 = arith.addf %98, %100 : vector<8x8xf32>
    %cst_43 = arith.constant dense<0xFF800000> : vector<8xf32>
    %102 = vector.multi_reduction <maximumf>, %101, %cst_43 [1] : vector<8x8xf32> to vector<8xf32>
    %103 = vector.shape_cast %102 : vector<8xf32> to vector<8x1xf32>
    %104 = vector.broadcast %103 : vector<8x1xf32> to vector<8x8xf32>
    %105 = arith.subf %101, %104 : vector<8x8xf32>
    %106 = math.exp %105 : vector<8x8xf32>
    %cst_44 = arith.constant dense<0.000000e+00> : vector<8xf32>
    %107 = vector.multi_reduction <add>, %106, %cst_44 [1] : vector<8x8xf32> to vector<8xf32>
    %108 = vector.shape_cast %107 : vector<8xf32> to vector<8x1xf32>
    %109 = vector.broadcast %108 : vector<8x1xf32> to vector<8x8xf32>
    %110 = arith.divf %106, %109 : vector<8x8xf32>
    %cst_45 = arith.constant dense<0.000000e+00> : vector<8x8xf32>
    %111 = tpu.matmul %110, %97, %cst_45 {dimension_numbers = #tpu.dot_dimension_numbers<[1], [0], [0], [1], [0, 0, 1, 1], [], []>} : vector<8x8xf32>, vector<8x8xf32>, vector<8x8xf32> -> vector<8x8xf32>
    %112 = vector.extract_strided_slice %92 {offsets = [0, 8], sizes = [8, 8], strides = [1, 1]} : vector<8x96xf32> to vector<8x8xf32>
    %cst_46 = arith.constant 0.353553385 : f32
    %113 = vector.broadcast %cst_46 : f32 to vector<8x8xf32>
    %114 = arith.mulf %112, %113 : vector<8x8xf32>
    %115 = vector.extract_strided_slice %92 {offsets = [0, 40], sizes = [8, 8], strides = [1, 1]} : vector<8x96xf32> to vector<8x8xf32>
    %116 = vector.extract_strided_slice %92 {offsets = [0, 72], sizes = [8, 8], strides = [1, 1]} : vector<8x96xf32> to vector<8x8xf32>
    %cst_47 = arith.constant dense<0.000000e+00> : vector<8x8xf32>
    %117 = tpu.matmul %114, %115, %cst_47 {dimension_numbers = #tpu.dot_dimension_numbers<[1], [1], [0], [0], [0, 0, 1, 0], [], []>} : vector<8x8xf32>, vector<8x8xf32>, vector<8x8xf32> -> vector<8x8xf32>
    %c1_48 = arith.constant 1 : index
    %c0_49 = arith.constant 0 : index
    %c0_50 = arith.constant 0 : index
    %118 = vector.load %arg2[%c1_48, %c0_49, %c0_50] : memref<4x8x8xf32, #tpu.memory_space<vmem>>, vector<1x8x8xf32>
    %119 = vector.shape_cast %118 : vector<1x8x8xf32> to vector<8x8xf32>
    %120 = arith.addf %117, %119 : vector<8x8xf32>
    %cst_51 = arith.constant dense<0xFF800000> : vector<8xf32>
    %121 = vector.multi_reduction <maximumf>, %120, %cst_51 [1] : vector<8x8xf32> to vector<8xf32>
    %122 = vector.shape_cast %121 : vector<8xf32> to vector<8x1xf32>
    %123 = vector.broadcast %122 : vector<8x1xf32> to vector<8x8xf32>
    %124 = arith.subf %120, %123 : vector<8x8xf32>
    %125 = math.exp %124 : vector<8x8xf32>
    %cst_52 = arith.constant dense<0.000000e+00> : vector<8xf32>
    %126 = vector.multi_reduction <add>, %125, %cst_52 [1] : vector<8x8xf32> to vector<8xf32>
    %127 = vector.shape_cast %126 : vector<8xf32> to vector<8x1xf32>
    %128 = vector.broadcast %127 : vector<8x1xf32> to vector<8x8xf32>
    %129 = arith.divf %125, %128 : vector<8x8xf32>
    %cst_53 = arith.constant dense<0.000000e+00> : vector<8x8xf32>
    %130 = tpu.matmul %129, %116, %cst_53 {dimension_numbers = #tpu.dot_dimension_numbers<[1], [0], [0], [1], [0, 0, 1, 1], [], []>} : vector<8x8xf32>, vector<8x8xf32>, vector<8x8xf32> -> vector<8x8xf32>
    %131 = vector.extract_strided_slice %92 {offsets = [0, 16], sizes = [8, 8], strides = [1, 1]} : vector<8x96xf32> to vector<8x8xf32>
    %cst_54 = arith.constant 0.353553385 : f32
    %132 = vector.broadcast %cst_54 : f32 to vector<8x8xf32>
    %133 = arith.mulf %131, %132 : vector<8x8xf32>
    %134 = vector.extract_strided_slice %92 {offsets = [0, 48], sizes = [8, 8], strides = [1, 1]} : vector<8x96xf32> to vector<8x8xf32>
    %135 = vector.extract_strided_slice %92 {offsets = [0, 80], sizes = [8, 8], strides = [1, 1]} : vector<8x96xf32> to vector<8x8xf32>
    %cst_55 = arith.constant dense<0.000000e+00> : vector<8x8xf32>
    %136 = tpu.matmul %133, %134, %cst_55 {dimension_numbers = #tpu.dot_dimension_numbers<[1], [1], [0], [0], [0, 0, 1, 0], [], []>} : vector<8x8xf32>, vector<8x8xf32>, vector<8x8xf32> -> vector<8x8xf32>
    %c2_56 = arith.constant 2 : index
    %c0_57 = arith.constant 0 : index
    %c0_58 = arith.constant 0 : index
    %137 = vector.load %arg2[%c2_56, %c0_57, %c0_58] : memref<4x8x8xf32, #tpu.memory_space<vmem>>, vector<1x8x8xf32>
    %138 = vector.shape_cast %137 : vector<1x8x8xf32> to vector<8x8xf32>
    %139 = arith.addf %136, %138 : vector<8x8xf32>
    %cst_59 = arith.constant dense<0xFF800000> : vector<8xf32>
    %140 = vector.multi_reduction <maximumf>, %139, %cst_59 [1] : vector<8x8xf32> to vector<8xf32>
    %141 = vector.shape_cast %140 : vector<8xf32> to vector<8x1xf32>
    %142 = vector.broadcast %141 : vector<8x1xf32> to vector<8x8xf32>
    %143 = arith.subf %139, %142 : vector<8x8xf32>
    %144 = math.exp %143 : vector<8x8xf32>
    %cst_60 = arith.constant dense<0.000000e+00> : vector<8xf32>
    %145 = vector.multi_reduction <add>, %144, %cst_60 [1] : vector<8x8xf32> to vector<8xf32>
    %146 = vector.shape_cast %145 : vector<8xf32> to vector<8x1xf32>
    %147 = vector.broadcast %146 : vector<8x1xf32> to vector<8x8xf32>
    %148 = arith.divf %144, %147 : vector<8x8xf32>
    %cst_61 = arith.constant dense<0.000000e+00> : vector<8x8xf32>
    %149 = tpu.matmul %148, %135, %cst_61 {dimension_numbers = #tpu.dot_dimension_numbers<[1], [0], [0], [1], [0, 0, 1, 1], [], []>} : vector<8x8xf32>, vector<8x8xf32>, vector<8x8xf32> -> vector<8x8xf32>
    %150 = vector.extract_strided_slice %92 {offsets = [0, 24], sizes = [8, 8], strides = [1, 1]} : vector<8x96xf32> to vector<8x8xf32>
    %cst_62 = arith.constant 0.353553385 : f32
    %151 = vector.broadcast %cst_62 : f32 to vector<8x8xf32>
    %152 = arith.mulf %150, %151 : vector<8x8xf32>
    %153 = vector.extract_strided_slice %92 {offsets = [0, 56], sizes = [8, 8], strides = [1, 1]} : vector<8x96xf32> to vector<8x8xf32>
    %154 = vector.extract_strided_slice %92 {offsets = [0, 88], sizes = [8, 8], strides = [1, 1]} : vector<8x96xf32> to vector<8x8xf32>
    %cst_63 = arith.constant dense<0.000000e+00> : vector<8x8xf32>
    %155 = tpu.matmul %152, %153, %cst_63 {dimension_numbers = #tpu.dot_dimension_numbers<[1], [1], [0], [0], [0, 0, 1, 0], [], []>} : vector<8x8xf32>, vector<8x8xf32>, vector<8x8xf32> -> vector<8x8xf32>
    %c3_64 = arith.constant 3 : index
    %c0_65 = arith.constant 0 : index
    %c0_66 = arith.constant 0 : index
    %156 = vector.load %arg2[%c3_64, %c0_65, %c0_66] : memref<4x8x8xf32, #tpu.memory_space<vmem>>, vector<1x8x8xf32>
    %157 = vector.shape_cast %156 : vector<1x8x8xf32> to vector<8x8xf32>
    %158 = arith.addf %155, %157 : vector<8x8xf32>
    %cst_67 = arith.constant dense<0xFF800000> : vector<8xf32>
    %159 = vector.multi_reduction <maximumf>, %158, %cst_67 [1] : vector<8x8xf32> to vector<8xf32>
    %160 = vector.shape_cast %159 : vector<8xf32> to vector<8x1xf32>
    %161 = vector.broadcast %160 : vector<8x1xf32> to vector<8x8xf32>
    %162 = arith.subf %158, %161 : vector<8x8xf32>
    %163 = math.exp %162 : vector<8x8xf32>
    %cst_68 = arith.constant dense<0.000000e+00> : vector<8xf32>
    %164 = vector.multi_reduction <add>, %163, %cst_68 [1] : vector<8x8xf32> to vector<8xf32>
    %165 = vector.shape_cast %164 : vector<8xf32> to vector<8x1xf32>
    %166 = vector.broadcast %165 : vector<8x1xf32> to vector<8x8xf32>
    %167 = arith.divf %163, %166 : vector<8x8xf32>
    %cst_69 = arith.constant dense<0.000000e+00> : vector<8x8xf32>
    %168 = tpu.matmul %167, %154, %cst_69 {dimension_numbers = #tpu.dot_dimension_numbers<[1], [0], [0], [1], [0, 0, 1, 1], [], []>} : vector<8x8xf32>, vector<8x8xf32>, vector<8x8xf32> -> vector<8x8xf32>
    %169 = tpu.concatenate %111, %130, %149, %168 in 1 : vector<8x8xf32>, vector<8x8xf32>, vector<8x8xf32>, vector<8x8xf32> -> vector<8x32xf32>
    %170 = tpu.concatenate %91, %169 in 0 : vector<8x32xf32>, vector<8x32xf32> -> vector<16x32xf32>
    %c48 = arith.constant 48 : index
    %c0_70 = arith.constant 0 : index
    %171 = vector.load %arg3[%c48, %c0_70] : memref<384x96xf32, #tpu.memory_space<vmem>>, vector<32x32xf32>
    %cst_71 = arith.constant dense<0.000000e+00> : vector<16x32xf32>
    %172 = tpu.matmul %170, %171, %cst_71 {dimension_numbers = #tpu.dot_dimension_numbers<[1], [0], [0], [1], [0, 0, 1, 1], [], []>} : vector<16x32xf32>, vector<32x32xf32>, vector<16x32xf32> -> vector<16x32xf32>
    %c1_72 = arith.constant 1 : index
    %c0_73 = arith.constant 0 : index
    %173 = vector.load %arg4[%c1_72, %c0_73] : memref<24x96xf32, #tpu.memory_space<vmem>>, vector<1x32xf32>
    %174 = vector.broadcast %173 : vector<1x32xf32> to vector<16x32xf32>
    %175 = arith.addf %172, %174 : vector<16x32xf32>
    %176 = arith.addf %8, %175 : vector<16x32xf32>
    %cst_74 = arith.constant dense<0.000000e+00> : vector<16xf32>
    %177 = vector.multi_reduction <add>, %176, %cst_74 [1] : vector<16x32xf32> to vector<16xf32>
    %178 = vector.shape_cast %177 : vector<16xf32> to vector<16x1xf32>
    %cst_75 = arith.constant 3.200000e+01 : f32
    %179 = vector.broadcast %cst_75 : f32 to vector<16x1xf32>
    %180 = arith.divf %178, %179 : vector<16x1xf32>
    %181 = vector.broadcast %180 : vector<16x1xf32> to vector<16x32xf32>
    %182 = arith.subf %176, %181 : vector<16x32xf32>
    %183 = arith.mulf %182, %182 : vector<16x32xf32>
    %cst_76 = arith.constant dense<0.000000e+00> : vector<16xf32>
    %184 = vector.multi_reduction <add>, %183, %cst_76 [1] : vector<16x32xf32> to vector<16xf32>
    %185 = vector.shape_cast %184 : vector<16xf32> to vector<16x1xf32>
    %cst_77 = arith.constant 3.200000e+01 : f32
    %186 = vector.broadcast %cst_77 : f32 to vector<16x1xf32>
    %187 = arith.divf %185, %186 : vector<16x1xf32>
    %cst_78 = arith.constant 9.99999974E-6 : f32
    %188 = vector.broadcast %cst_78 : f32 to vector<16x1xf32>
    %189 = arith.addf %187, %188 : vector<16x1xf32>
    %190 = math.rsqrt %189 : vector<16x1xf32>
    %191 = vector.broadcast %190 : vector<16x1xf32> to vector<16x32xf32>
    %192 = arith.mulf %182, %191 : vector<16x32xf32>
    %c2_79 = arith.constant 2 : index
    %c0_80 = arith.constant 0 : index
    %193 = vector.load %arg4[%c2_79, %c0_80] : memref<24x96xf32, #tpu.memory_space<vmem>>, vector<1x32xf32>
    %194 = vector.broadcast %193 : vector<1x32xf32> to vector<16x32xf32>
    %195 = arith.mulf %192, %194 : vector<16x32xf32>
    %c3_81 = arith.constant 3 : index
    %c0_82 = arith.constant 0 : index
    %196 = vector.load %arg4[%c3_81, %c0_82] : memref<24x96xf32, #tpu.memory_space<vmem>>, vector<1x32xf32>
    %197 = vector.broadcast %196 : vector<1x32xf32> to vector<16x32xf32>
    %198 = arith.addf %195, %197 : vector<16x32xf32>
    %c80 = arith.constant 80 : index
    %c0_83 = arith.constant 0 : index
    %199 = vector.load %arg3[%c80, %c0_83] : memref<384x96xf32, #tpu.memory_space<vmem>>, vector<32x64xf32>
    %cst_84 = arith.constant dense<0.000000e+00> : vector<16x64xf32>
    %200 = tpu.matmul %198, %199, %cst_84 {dimension_numbers = #tpu.dot_dimension_numbers<[1], [0], [0], [1], [0, 0, 1, 1], [], []>} : vector<16x32xf32>, vector<32x64xf32>, vector<16x64xf32> -> vector<16x64xf32>
    %c4 = arith.constant 4 : index
    %c0_85 = arith.constant 0 : index
    %201 = vector.load %arg4[%c4, %c0_85] : memref<24x96xf32, #tpu.memory_space<vmem>>, vector<1x64xf32>
    %202 = vector.broadcast %201 : vector<1x64xf32> to vector<16x64xf32>
    %203 = arith.addf %200, %202 : vector<16x64xf32>
    %cst_86 = arith.constant 0.000000e+00 : f32
    %204 = vector.broadcast %cst_86 : f32 to vector<16x64xf32>
    %205 = arith.maximumf %203, %204 : vector<16x64xf32>
    %c112 = arith.constant 112 : index
    %c0_87 = arith.constant 0 : index
    %206 = vector.load %arg3[%c112, %c0_87] : memref<384x96xf32, #tpu.memory_space<vmem>>, vector<64x32xf32>
    %cst_88 = arith.constant dense<0.000000e+00> : vector<16x32xf32>
    %207 = tpu.matmul %205, %206, %cst_88 {dimension_numbers = #tpu.dot_dimension_numbers<[1], [0], [0], [1], [0, 0, 1, 1], [], []>} : vector<16x64xf32>, vector<64x32xf32>, vector<16x32xf32> -> vector<16x32xf32>
    %c5 = arith.constant 5 : index
    %c0_89 = arith.constant 0 : index
    %208 = vector.load %arg4[%c5, %c0_89] : memref<24x96xf32, #tpu.memory_space<vmem>>, vector<1x32xf32>
    %209 = vector.broadcast %208 : vector<1x32xf32> to vector<16x32xf32>
    %210 = arith.addf %207, %209 : vector<16x32xf32>
    %211 = arith.addf %198, %210 : vector<16x32xf32>
    %cst_90 = arith.constant dense<0.000000e+00> : vector<16xf32>
    %212 = vector.multi_reduction <add>, %211, %cst_90 [1] : vector<16x32xf32> to vector<16xf32>
    %213 = vector.shape_cast %212 : vector<16xf32> to vector<16x1xf32>
    %cst_91 = arith.constant 3.200000e+01 : f32
    %214 = vector.broadcast %cst_91 : f32 to vector<16x1xf32>
    %215 = arith.divf %213, %214 : vector<16x1xf32>
    %216 = vector.broadcast %215 : vector<16x1xf32> to vector<16x32xf32>
    %217 = arith.subf %211, %216 : vector<16x32xf32>
    %218 = arith.mulf %217, %217 : vector<16x32xf32>
    %cst_92 = arith.constant dense<0.000000e+00> : vector<16xf32>
    %219 = vector.multi_reduction <add>, %218, %cst_92 [1] : vector<16x32xf32> to vector<16xf32>
    %220 = vector.shape_cast %219 : vector<16xf32> to vector<16x1xf32>
    %cst_93 = arith.constant 3.200000e+01 : f32
    %221 = vector.broadcast %cst_93 : f32 to vector<16x1xf32>
    %222 = arith.divf %220, %221 : vector<16x1xf32>
    %cst_94 = arith.constant 9.99999974E-6 : f32
    %223 = vector.broadcast %cst_94 : f32 to vector<16x1xf32>
    %224 = arith.addf %222, %223 : vector<16x1xf32>
    %225 = math.rsqrt %224 : vector<16x1xf32>
    %226 = vector.broadcast %225 : vector<16x1xf32> to vector<16x32xf32>
    %227 = arith.mulf %217, %226 : vector<16x32xf32>
    %c6 = arith.constant 6 : index
    %c0_95 = arith.constant 0 : index
    %228 = vector.load %arg4[%c6, %c0_95] : memref<24x96xf32, #tpu.memory_space<vmem>>, vector<1x32xf32>
    %229 = vector.broadcast %228 : vector<1x32xf32> to vector<16x32xf32>
    %230 = arith.mulf %227, %229 : vector<16x32xf32>
    %c7 = arith.constant 7 : index
    %c0_96 = arith.constant 0 : index
    %231 = vector.load %arg4[%c7, %c0_96] : memref<24x96xf32, #tpu.memory_space<vmem>>, vector<1x32xf32>
    %232 = vector.broadcast %231 : vector<1x32xf32> to vector<16x32xf32>
    %233 = arith.addf %230, %232 : vector<16x32xf32>
    %c176 = arith.constant 176 : index
    %c0_97 = arith.constant 0 : index
    %234 = vector.load %arg3[%c176, %c0_97] : memref<384x96xf32, #tpu.memory_space<vmem>>, vector<32x96xf32>
    %cst_98 = arith.constant dense<0.000000e+00> : vector<16x96xf32>
    %235 = tpu.matmul %233, %234, %cst_98 {dimension_numbers = #tpu.dot_dimension_numbers<[1], [0], [0], [1], [0, 0, 1, 1], [], []>} : vector<16x32xf32>, vector<32x96xf32>, vector<16x96xf32> -> vector<16x96xf32>
    %c8 = arith.constant 8 : index
    %c0_99 = arith.constant 0 : index
    %236 = vector.load %arg4[%c8, %c0_99] : memref<24x96xf32, #tpu.memory_space<vmem>>, vector<1x96xf32>
    %237 = vector.broadcast %236 : vector<1x96xf32> to vector<16x96xf32>
    %238 = arith.addf %235, %237 : vector<16x96xf32>
    %239 = vector.extract_strided_slice %238 {offsets = [0, 0], sizes = [8, 96], strides = [1, 1]} : vector<16x96xf32> to vector<8x96xf32>
    %240 = vector.extract_strided_slice %239 {offsets = [0, 0], sizes = [8, 8], strides = [1, 1]} : vector<8x96xf32> to vector<8x8xf32>
    %cst_100 = arith.constant 0.353553385 : f32
    %241 = vector.broadcast %cst_100 : f32 to vector<8x8xf32>
    %242 = arith.mulf %240, %241 : vector<8x8xf32>
    %243 = vector.extract_strided_slice %239 {offsets = [0, 32], sizes = [8, 8], strides = [1, 1]} : vector<8x96xf32> to vector<8x8xf32>
    %244 = vector.extract_strided_slice %239 {offsets = [0, 64], sizes = [8, 8], strides = [1, 1]} : vector<8x96xf32> to vector<8x8xf32>
    %cst_101 = arith.constant dense<0.000000e+00> : vector<8x8xf32>
    %245 = tpu.matmul %242, %243, %cst_101 {dimension_numbers = #tpu.dot_dimension_numbers<[1], [1], [0], [0], [0, 0, 1, 0], [], []>} : vector<8x8xf32>, vector<8x8xf32>, vector<8x8xf32> -> vector<8x8xf32>
    %cst_102 = arith.constant dense<0xFF800000> : vector<8xf32>
    %246 = vector.multi_reduction <maximumf>, %245, %cst_102 [1] : vector<8x8xf32> to vector<8xf32>
    %247 = vector.shape_cast %246 : vector<8xf32> to vector<8x1xf32>
    %248 = vector.broadcast %247 : vector<8x1xf32> to vector<8x8xf32>
    %249 = arith.subf %245, %248 : vector<8x8xf32>
    %250 = math.exp %249 : vector<8x8xf32>
    %cst_103 = arith.constant dense<0.000000e+00> : vector<8xf32>
    %251 = vector.multi_reduction <add>, %250, %cst_103 [1] : vector<8x8xf32> to vector<8xf32>
    %252 = vector.shape_cast %251 : vector<8xf32> to vector<8x1xf32>
    %253 = vector.broadcast %252 : vector<8x1xf32> to vector<8x8xf32>
    %254 = arith.divf %250, %253 : vector<8x8xf32>
    %cst_104 = arith.constant dense<0.000000e+00> : vector<8x8xf32>
    %255 = tpu.matmul %254, %244, %cst_104 {dimension_numbers = #tpu.dot_dimension_numbers<[1], [0], [0], [1], [0, 0, 1, 1], [], []>} : vector<8x8xf32>, vector<8x8xf32>, vector<8x8xf32> -> vector<8x8xf32>
    %256 = vector.extract_strided_slice %239 {offsets = [0, 8], sizes = [8, 8], strides = [1, 1]} : vector<8x96xf32> to vector<8x8xf32>
    %cst_105 = arith.constant 0.353553385 : f32
    %257 = vector.broadcast %cst_105 : f32 to vector<8x8xf32>
    %258 = arith.mulf %256, %257 : vector<8x8xf32>
    %259 = vector.extract_strided_slice %239 {offsets = [0, 40], sizes = [8, 8], strides = [1, 1]} : vector<8x96xf32> to vector<8x8xf32>
    %260 = vector.extract_strided_slice %239 {offsets = [0, 72], sizes = [8, 8], strides = [1, 1]} : vector<8x96xf32> to vector<8x8xf32>
    %cst_106 = arith.constant dense<0.000000e+00> : vector<8x8xf32>
    %261 = tpu.matmul %258, %259, %cst_106 {dimension_numbers = #tpu.dot_dimension_numbers<[1], [1], [0], [0], [0, 0, 1, 0], [], []>} : vector<8x8xf32>, vector<8x8xf32>, vector<8x8xf32> -> vector<8x8xf32>
    %cst_107 = arith.constant dense<0xFF800000> : vector<8xf32>
    %262 = vector.multi_reduction <maximumf>, %261, %cst_107 [1] : vector<8x8xf32> to vector<8xf32>
    %263 = vector.shape_cast %262 : vector<8xf32> to vector<8x1xf32>
    %264 = vector.broadcast %263 : vector<8x1xf32> to vector<8x8xf32>
    %265 = arith.subf %261, %264 : vector<8x8xf32>
    %266 = math.exp %265 : vector<8x8xf32>
    %cst_108 = arith.constant dense<0.000000e+00> : vector<8xf32>
    %267 = vector.multi_reduction <add>, %266, %cst_108 [1] : vector<8x8xf32> to vector<8xf32>
    %268 = vector.shape_cast %267 : vector<8xf32> to vector<8x1xf32>
    %269 = vector.broadcast %268 : vector<8x1xf32> to vector<8x8xf32>
    %270 = arith.divf %266, %269 : vector<8x8xf32>
    %cst_109 = arith.constant dense<0.000000e+00> : vector<8x8xf32>
    %271 = tpu.matmul %270, %260, %cst_109 {dimension_numbers = #tpu.dot_dimension_numbers<[1], [0], [0], [1], [0, 0, 1, 1], [], []>} : vector<8x8xf32>, vector<8x8xf32>, vector<8x8xf32> -> vector<8x8xf32>
    %272 = vector.extract_strided_slice %239 {offsets = [0, 16], sizes = [8, 8], strides = [1, 1]} : vector<8x96xf32> to vector<8x8xf32>
    %cst_110 = arith.constant 0.353553385 : f32
    %273 = vector.broadcast %cst_110 : f32 to vector<8x8xf32>
    %274 = arith.mulf %272, %273 : vector<8x8xf32>
    %275 = vector.extract_strided_slice %239 {offsets = [0, 48], sizes = [8, 8], strides = [1, 1]} : vector<8x96xf32> to vector<8x8xf32>
    %276 = vector.extract_strided_slice %239 {offsets = [0, 80], sizes = [8, 8], strides = [1, 1]} : vector<8x96xf32> to vector<8x8xf32>
    %cst_111 = arith.constant dense<0.000000e+00> : vector<8x8xf32>
    %277 = tpu.matmul %274, %275, %cst_111 {dimension_numbers = #tpu.dot_dimension_numbers<[1], [1], [0], [0], [0, 0, 1, 0], [], []>} : vector<8x8xf32>, vector<8x8xf32>, vector<8x8xf32> -> vector<8x8xf32>
    %cst_112 = arith.constant dense<0xFF800000> : vector<8xf32>
    %278 = vector.multi_reduction <maximumf>, %277, %cst_112 [1] : vector<8x8xf32> to vector<8xf32>
    %279 = vector.shape_cast %278 : vector<8xf32> to vector<8x1xf32>
    %280 = vector.broadcast %279 : vector<8x1xf32> to vector<8x8xf32>
    %281 = arith.subf %277, %280 : vector<8x8xf32>
    %282 = math.exp %281 : vector<8x8xf32>
    %cst_113 = arith.constant dense<0.000000e+00> : vector<8xf32>
    %283 = vector.multi_reduction <add>, %282, %cst_113 [1] : vector<8x8xf32> to vector<8xf32>
    %284 = vector.shape_cast %283 : vector<8xf32> to vector<8x1xf32>
    %285 = vector.broadcast %284 : vector<8x1xf32> to vector<8x8xf32>
    %286 = arith.divf %282, %285 : vector<8x8xf32>
    %cst_114 = arith.constant dense<0.000000e+00> : vector<8x8xf32>
    %287 = tpu.matmul %286, %276, %cst_114 {dimension_numbers = #tpu.dot_dimension_numbers<[1], [0], [0], [1], [0, 0, 1, 1], [], []>} : vector<8x8xf32>, vector<8x8xf32>, vector<8x8xf32> -> vector<8x8xf32>
    %288 = vector.extract_strided_slice %239 {offsets = [0, 24], sizes = [8, 8], strides = [1, 1]} : vector<8x96xf32> to vector<8x8xf32>
    %cst_115 = arith.constant 0.353553385 : f32
    %289 = vector.broadcast %cst_115 : f32 to vector<8x8xf32>
    %290 = arith.mulf %288, %289 : vector<8x8xf32>
    %291 = vector.extract_strided_slice %239 {offsets = [0, 56], sizes = [8, 8], strides = [1, 1]} : vector<8x96xf32> to vector<8x8xf32>
    %292 = vector.extract_strided_slice %239 {offsets = [0, 88], sizes = [8, 8], strides = [1, 1]} : vector<8x96xf32> to vector<8x8xf32>
    %cst_116 = arith.constant dense<0.000000e+00> : vector<8x8xf32>
    %293 = tpu.matmul %290, %291, %cst_116 {dimension_numbers = #tpu.dot_dimension_numbers<[1], [1], [0], [0], [0, 0, 1, 0], [], []>} : vector<8x8xf32>, vector<8x8xf32>, vector<8x8xf32> -> vector<8x8xf32>
    %cst_117 = arith.constant dense<0xFF800000> : vector<8xf32>
    %294 = vector.multi_reduction <maximumf>, %293, %cst_117 [1] : vector<8x8xf32> to vector<8xf32>
    %295 = vector.shape_cast %294 : vector<8xf32> to vector<8x1xf32>
    %296 = vector.broadcast %295 : vector<8x1xf32> to vector<8x8xf32>
    %297 = arith.subf %293, %296 : vector<8x8xf32>
    %298 = math.exp %297 : vector<8x8xf32>
    %cst_118 = arith.constant dense<0.000000e+00> : vector<8xf32>
    %299 = vector.multi_reduction <add>, %298, %cst_118 [1] : vector<8x8xf32> to vector<8xf32>
    %300 = vector.shape_cast %299 : vector<8xf32> to vector<8x1xf32>
    %301 = vector.broadcast %300 : vector<8x1xf32> to vector<8x8xf32>
    %302 = arith.divf %298, %301 : vector<8x8xf32>
    %cst_119 = arith.constant dense<0.000000e+00> : vector<8x8xf32>
    %303 = tpu.matmul %302, %292, %cst_119 {dimension_numbers = #tpu.dot_dimension_numbers<[1], [0], [0], [1], [0, 0, 1, 1], [], []>} : vector<8x8xf32>, vector<8x8xf32>, vector<8x8xf32> -> vector<8x8xf32>
    %304 = tpu.concatenate %255, %271, %287, %303 in 1 : vector<8x8xf32>, vector<8x8xf32>, vector<8x8xf32>, vector<8x8xf32> -> vector<8x32xf32>
    %305 = vector.extract_strided_slice %238 {offsets = [8, 0], sizes = [8, 96], strides = [1, 1]} : vector<16x96xf32> to vector<8x96xf32>
    %306 = vector.extract_strided_slice %305 {offsets = [0, 0], sizes = [8, 8], strides = [1, 1]} : vector<8x96xf32> to vector<8x8xf32>
    %cst_120 = arith.constant 0.353553385 : f32
    %307 = vector.broadcast %cst_120 : f32 to vector<8x8xf32>
    %308 = arith.mulf %306, %307 : vector<8x8xf32>
    %309 = vector.extract_strided_slice %305 {offsets = [0, 32], sizes = [8, 8], strides = [1, 1]} : vector<8x96xf32> to vector<8x8xf32>
    %310 = vector.extract_strided_slice %305 {offsets = [0, 64], sizes = [8, 8], strides = [1, 1]} : vector<8x96xf32> to vector<8x8xf32>
    %cst_121 = arith.constant dense<0.000000e+00> : vector<8x8xf32>
    %311 = tpu.matmul %308, %309, %cst_121 {dimension_numbers = #tpu.dot_dimension_numbers<[1], [1], [0], [0], [0, 0, 1, 0], [], []>} : vector<8x8xf32>, vector<8x8xf32>, vector<8x8xf32> -> vector<8x8xf32>
    %cst_122 = arith.constant dense<0xFF800000> : vector<8xf32>
    %312 = vector.multi_reduction <maximumf>, %311, %cst_122 [1] : vector<8x8xf32> to vector<8xf32>
    %313 = vector.shape_cast %312 : vector<8xf32> to vector<8x1xf32>
    %314 = vector.broadcast %313 : vector<8x1xf32> to vector<8x8xf32>
    %315 = arith.subf %311, %314 : vector<8x8xf32>
    %316 = math.exp %315 : vector<8x8xf32>
    %cst_123 = arith.constant dense<0.000000e+00> : vector<8xf32>
    %317 = vector.multi_reduction <add>, %316, %cst_123 [1] : vector<8x8xf32> to vector<8xf32>
    %318 = vector.shape_cast %317 : vector<8xf32> to vector<8x1xf32>
    %319 = vector.broadcast %318 : vector<8x1xf32> to vector<8x8xf32>
    %320 = arith.divf %316, %319 : vector<8x8xf32>
    %cst_124 = arith.constant dense<0.000000e+00> : vector<8x8xf32>
    %321 = tpu.matmul %320, %310, %cst_124 {dimension_numbers = #tpu.dot_dimension_numbers<[1], [0], [0], [1], [0, 0, 1, 1], [], []>} : vector<8x8xf32>, vector<8x8xf32>, vector<8x8xf32> -> vector<8x8xf32>
    %322 = vector.extract_strided_slice %305 {offsets = [0, 8], sizes = [8, 8], strides = [1, 1]} : vector<8x96xf32> to vector<8x8xf32>
    %cst_125 = arith.constant 0.353553385 : f32
    %323 = vector.broadcast %cst_125 : f32 to vector<8x8xf32>
    %324 = arith.mulf %322, %323 : vector<8x8xf32>
    %325 = vector.extract_strided_slice %305 {offsets = [0, 40], sizes = [8, 8], strides = [1, 1]} : vector<8x96xf32> to vector<8x8xf32>
    %326 = vector.extract_strided_slice %305 {offsets = [0, 72], sizes = [8, 8], strides = [1, 1]} : vector<8x96xf32> to vector<8x8xf32>
    %cst_126 = arith.constant dense<0.000000e+00> : vector<8x8xf32>
    %327 = tpu.matmul %324, %325, %cst_126 {dimension_numbers = #tpu.dot_dimension_numbers<[1], [1], [0], [0], [0, 0, 1, 0], [], []>} : vector<8x8xf32>, vector<8x8xf32>, vector<8x8xf32> -> vector<8x8xf32>
    %cst_127 = arith.constant dense<0xFF800000> : vector<8xf32>
    %328 = vector.multi_reduction <maximumf>, %327, %cst_127 [1] : vector<8x8xf32> to vector<8xf32>
    %329 = vector.shape_cast %328 : vector<8xf32> to vector<8x1xf32>
    %330 = vector.broadcast %329 : vector<8x1xf32> to vector<8x8xf32>
    %331 = arith.subf %327, %330 : vector<8x8xf32>
    %332 = math.exp %331 : vector<8x8xf32>
    %cst_128 = arith.constant dense<0.000000e+00> : vector<8xf32>
    %333 = vector.multi_reduction <add>, %332, %cst_128 [1] : vector<8x8xf32> to vector<8xf32>
    %334 = vector.shape_cast %333 : vector<8xf32> to vector<8x1xf32>
    %335 = vector.broadcast %334 : vector<8x1xf32> to vector<8x8xf32>
    %336 = arith.divf %332, %335 : vector<8x8xf32>
    %cst_129 = arith.constant dense<0.000000e+00> : vector<8x8xf32>
    %337 = tpu.matmul %336, %326, %cst_129 {dimension_numbers = #tpu.dot_dimension_numbers<[1], [0], [0], [1], [0, 0, 1, 1], [], []>} : vector<8x8xf32>, vector<8x8xf32>, vector<8x8xf32> -> vector<8x8xf32>
    %338 = vector.extract_strided_slice %305 {offsets = [0, 16], sizes = [8, 8], strides = [1, 1]} : vector<8x96xf32> to vector<8x8xf32>
    %cst_130 = arith.constant 0.353553385 : f32
    %339 = vector.broadcast %cst_130 : f32 to vector<8x8xf32>
    %340 = arith.mulf %338, %339 : vector<8x8xf32>
    %341 = vector.extract_strided_slice %305 {offsets = [0, 48], sizes = [8, 8], strides = [1, 1]} : vector<8x96xf32> to vector<8x8xf32>
    %342 = vector.extract_strided_slice %305 {offsets = [0, 80], sizes = [8, 8], strides = [1, 1]} : vector<8x96xf32> to vector<8x8xf32>
    %cst_131 = arith.constant dense<0.000000e+00> : vector<8x8xf32>
    %343 = tpu.matmul %340, %341, %cst_131 {dimension_numbers = #tpu.dot_dimension_numbers<[1], [1], [0], [0], [0, 0, 1, 0], [], []>} : vector<8x8xf32>, vector<8x8xf32>, vector<8x8xf32> -> vector<8x8xf32>
    %cst_132 = arith.constant dense<0xFF800000> : vector<8xf32>
    %344 = vector.multi_reduction <maximumf>, %343, %cst_132 [1] : vector<8x8xf32> to vector<8xf32>
    %345 = vector.shape_cast %344 : vector<8xf32> to vector<8x1xf32>
    %346 = vector.broadcast %345 : vector<8x1xf32> to vector<8x8xf32>
    %347 = arith.subf %343, %346 : vector<8x8xf32>
    %348 = math.exp %347 : vector<8x8xf32>
    %cst_133 = arith.constant dense<0.000000e+00> : vector<8xf32>
    %349 = vector.multi_reduction <add>, %348, %cst_133 [1] : vector<8x8xf32> to vector<8xf32>
    %350 = vector.shape_cast %349 : vector<8xf32> to vector<8x1xf32>
    %351 = vector.broadcast %350 : vector<8x1xf32> to vector<8x8xf32>
    %352 = arith.divf %348, %351 : vector<8x8xf32>
    %cst_134 = arith.constant dense<0.000000e+00> : vector<8x8xf32>
    %353 = tpu.matmul %352, %342, %cst_134 {dimension_numbers = #tpu.dot_dimension_numbers<[1], [0], [0], [1], [0, 0, 1, 1], [], []>} : vector<8x8xf32>, vector<8x8xf32>, vector<8x8xf32> -> vector<8x8xf32>
    %354 = vector.extract_strided_slice %305 {offsets = [0, 24], sizes = [8, 8], strides = [1, 1]} : vector<8x96xf32> to vector<8x8xf32>
    %cst_135 = arith.constant 0.353553385 : f32
    %355 = vector.broadcast %cst_135 : f32 to vector<8x8xf32>
    %356 = arith.mulf %354, %355 : vector<8x8xf32>
    %357 = vector.extract_strided_slice %305 {offsets = [0, 56], sizes = [8, 8], strides = [1, 1]} : vector<8x96xf32> to vector<8x8xf32>
    %358 = vector.extract_strided_slice %305 {offsets = [0, 88], sizes = [8, 8], strides = [1, 1]} : vector<8x96xf32> to vector<8x8xf32>
    %cst_136 = arith.constant dense<0.000000e+00> : vector<8x8xf32>
    %359 = tpu.matmul %356, %357, %cst_136 {dimension_numbers = #tpu.dot_dimension_numbers<[1], [1], [0], [0], [0, 0, 1, 0], [], []>} : vector<8x8xf32>, vector<8x8xf32>, vector<8x8xf32> -> vector<8x8xf32>
    %cst_137 = arith.constant dense<0xFF800000> : vector<8xf32>
    %360 = vector.multi_reduction <maximumf>, %359, %cst_137 [1] : vector<8x8xf32> to vector<8xf32>
    %361 = vector.shape_cast %360 : vector<8xf32> to vector<8x1xf32>
    %362 = vector.broadcast %361 : vector<8x1xf32> to vector<8x8xf32>
    %363 = arith.subf %359, %362 : vector<8x8xf32>
    %364 = math.exp %363 : vector<8x8xf32>
    %cst_138 = arith.constant dense<0.000000e+00> : vector<8xf32>
    %365 = vector.multi_reduction <add>, %364, %cst_138 [1] : vector<8x8xf32> to vector<8xf32>
    %366 = vector.shape_cast %365 : vector<8xf32> to vector<8x1xf32>
    %367 = vector.broadcast %366 : vector<8x1xf32> to vector<8x8xf32>
    %368 = arith.divf %364, %367 : vector<8x8xf32>
    %cst_139 = arith.constant dense<0.000000e+00> : vector<8x8xf32>
    %369 = tpu.matmul %368, %358, %cst_139 {dimension_numbers = #tpu.dot_dimension_numbers<[1], [0], [0], [1], [0, 0, 1, 1], [], []>} : vector<8x8xf32>, vector<8x8xf32>, vector<8x8xf32> -> vector<8x8xf32>
    %370 = tpu.concatenate %321, %337, %353, %369 in 1 : vector<8x8xf32>, vector<8x8xf32>, vector<8x8xf32>, vector<8x8xf32> -> vector<8x32xf32>
    %371 = tpu.concatenate %304, %370 in 0 : vector<8x32xf32>, vector<8x32xf32> -> vector<16x32xf32>
    %c208 = arith.constant 208 : index
    %c0_140 = arith.constant 0 : index
    %372 = vector.load %arg3[%c208, %c0_140] : memref<384x96xf32, #tpu.memory_space<vmem>>, vector<32x32xf32>
    %cst_141 = arith.constant dense<0.000000e+00> : vector<16x32xf32>
    %373 = tpu.matmul %371, %372, %cst_141 {dimension_numbers = #tpu.dot_dimension_numbers<[1], [0], [0], [1], [0, 0, 1, 1], [], []>} : vector<16x32xf32>, vector<32x32xf32>, vector<16x32xf32> -> vector<16x32xf32>
    %c9 = arith.constant 9 : index
    %c0_142 = arith.constant 0 : index
    %374 = vector.load %arg4[%c9, %c0_142] : memref<24x96xf32, #tpu.memory_space<vmem>>, vector<1x32xf32>
    %375 = vector.broadcast %374 : vector<1x32xf32> to vector<16x32xf32>
    %376 = arith.addf %373, %375 : vector<16x32xf32>
    %377 = arith.addf %233, %376 : vector<16x32xf32>
    %cst_143 = arith.constant dense<0.000000e+00> : vector<16xf32>
    %378 = vector.multi_reduction <add>, %377, %cst_143 [1] : vector<16x32xf32> to vector<16xf32>
    %379 = vector.shape_cast %378 : vector<16xf32> to vector<16x1xf32>
    %cst_144 = arith.constant 3.200000e+01 : f32
    %380 = vector.broadcast %cst_144 : f32 to vector<16x1xf32>
    %381 = arith.divf %379, %380 : vector<16x1xf32>
    %382 = vector.broadcast %381 : vector<16x1xf32> to vector<16x32xf32>
    %383 = arith.subf %377, %382 : vector<16x32xf32>
    %384 = arith.mulf %383, %383 : vector<16x32xf32>
    %cst_145 = arith.constant dense<0.000000e+00> : vector<16xf32>
    %385 = vector.multi_reduction <add>, %384, %cst_145 [1] : vector<16x32xf32> to vector<16xf32>
    %386 = vector.shape_cast %385 : vector<16xf32> to vector<16x1xf32>
    %cst_146 = arith.constant 3.200000e+01 : f32
    %387 = vector.broadcast %cst_146 : f32 to vector<16x1xf32>
    %388 = arith.divf %386, %387 : vector<16x1xf32>
    %cst_147 = arith.constant 9.99999974E-6 : f32
    %389 = vector.broadcast %cst_147 : f32 to vector<16x1xf32>
    %390 = arith.addf %388, %389 : vector<16x1xf32>
    %391 = math.rsqrt %390 : vector<16x1xf32>
    %392 = vector.broadcast %391 : vector<16x1xf32> to vector<16x32xf32>
    %393 = arith.mulf %383, %392 : vector<16x32xf32>
    %c10 = arith.constant 10 : index
    %c0_148 = arith.constant 0 : index
    %394 = vector.load %arg4[%c10, %c0_148] : memref<24x96xf32, #tpu.memory_space<vmem>>, vector<1x32xf32>
    %395 = vector.broadcast %394 : vector<1x32xf32> to vector<16x32xf32>
    %396 = arith.mulf %393, %395 : vector<16x32xf32>
    %c11 = arith.constant 11 : index
    %c0_149 = arith.constant 0 : index
    %397 = vector.load %arg4[%c11, %c0_149] : memref<24x96xf32, #tpu.memory_space<vmem>>, vector<1x32xf32>
    %398 = vector.broadcast %397 : vector<1x32xf32> to vector<16x32xf32>
    %399 = arith.addf %396, %398 : vector<16x32xf32>
    %c240 = arith.constant 240 : index
    %c0_150 = arith.constant 0 : index
    %400 = vector.load %arg3[%c240, %c0_150] : memref<384x96xf32, #tpu.memory_space<vmem>>, vector<32x64xf32>
    %cst_151 = arith.constant dense<0.000000e+00> : vector<16x64xf32>
    %401 = tpu.matmul %399, %400, %cst_151 {dimension_numbers = #tpu.dot_dimension_numbers<[1], [0], [0], [1], [0, 0, 1, 1], [], []>} : vector<16x32xf32>, vector<32x64xf32>, vector<16x64xf32> -> vector<16x64xf32>
    %c12 = arith.constant 12 : index
    %c0_152 = arith.constant 0 : index
    %402 = vector.load %arg4[%c12, %c0_152] : memref<24x96xf32, #tpu.memory_space<vmem>>, vector<1x64xf32>
    %403 = vector.broadcast %402 : vector<1x64xf32> to vector<16x64xf32>
    %404 = arith.addf %401, %403 : vector<16x64xf32>
    %cst_153 = arith.constant 0.000000e+00 : f32
    %405 = vector.broadcast %cst_153 : f32 to vector<16x64xf32>
    %406 = arith.maximumf %404, %405 : vector<16x64xf32>
    %c272 = arith.constant 272 : index
    %c0_154 = arith.constant 0 : index
    %407 = vector.load %arg3[%c272, %c0_154] : memref<384x96xf32, #tpu.memory_space<vmem>>, vector<64x32xf32>
    %cst_155 = arith.constant dense<0.000000e+00> : vector<16x32xf32>
    %408 = tpu.matmul %406, %407, %cst_155 {dimension_numbers = #tpu.dot_dimension_numbers<[1], [0], [0], [1], [0, 0, 1, 1], [], []>} : vector<16x64xf32>, vector<64x32xf32>, vector<16x32xf32> -> vector<16x32xf32>
    %c13 = arith.constant 13 : index
    %c0_156 = arith.constant 0 : index
    %409 = vector.load %arg4[%c13, %c0_156] : memref<24x96xf32, #tpu.memory_space<vmem>>, vector<1x32xf32>
    %410 = vector.broadcast %409 : vector<1x32xf32> to vector<16x32xf32>
    %411 = arith.addf %408, %410 : vector<16x32xf32>
    %412 = arith.addf %399, %411 : vector<16x32xf32>
    %cst_157 = arith.constant dense<0.000000e+00> : vector<16xf32>
    %413 = vector.multi_reduction <add>, %412, %cst_157 [1] : vector<16x32xf32> to vector<16xf32>
    %414 = vector.shape_cast %413 : vector<16xf32> to vector<16x1xf32>
    %cst_158 = arith.constant 3.200000e+01 : f32
    %415 = vector.broadcast %cst_158 : f32 to vector<16x1xf32>
    %416 = arith.divf %414, %415 : vector<16x1xf32>
    %417 = vector.broadcast %416 : vector<16x1xf32> to vector<16x32xf32>
    %418 = arith.subf %412, %417 : vector<16x32xf32>
    %419 = arith.mulf %418, %418 : vector<16x32xf32>
    %cst_159 = arith.constant dense<0.000000e+00> : vector<16xf32>
    %420 = vector.multi_reduction <add>, %419, %cst_159 [1] : vector<16x32xf32> to vector<16xf32>
    %421 = vector.shape_cast %420 : vector<16xf32> to vector<16x1xf32>
    %cst_160 = arith.constant 3.200000e+01 : f32
    %422 = vector.broadcast %cst_160 : f32 to vector<16x1xf32>
    %423 = arith.divf %421, %422 : vector<16x1xf32>
    %cst_161 = arith.constant 9.99999974E-6 : f32
    %424 = vector.broadcast %cst_161 : f32 to vector<16x1xf32>
    %425 = arith.addf %423, %424 : vector<16x1xf32>
    %426 = math.rsqrt %425 : vector<16x1xf32>
    %427 = vector.broadcast %426 : vector<16x1xf32> to vector<16x32xf32>
    %428 = arith.mulf %418, %427 : vector<16x32xf32>
    %c14 = arith.constant 14 : index
    %c0_162 = arith.constant 0 : index
    %429 = vector.load %arg4[%c14, %c0_162] : memref<24x96xf32, #tpu.memory_space<vmem>>, vector<1x32xf32>
    %430 = vector.broadcast %429 : vector<1x32xf32> to vector<16x32xf32>
    %431 = arith.mulf %428, %430 : vector<16x32xf32>
    %c15 = arith.constant 15 : index
    %c0_163 = arith.constant 0 : index
    %432 = vector.load %arg4[%c15, %c0_163] : memref<24x96xf32, #tpu.memory_space<vmem>>, vector<1x32xf32>
    %433 = vector.broadcast %432 : vector<1x32xf32> to vector<16x32xf32>
    %434 = arith.addf %431, %433 : vector<16x32xf32>
    %cst_164 = arith.constant dense<0.000000e+00> : vector<16xf32>
    %435 = vector.multi_reduction <add>, %434, %cst_164 [1] : vector<16x32xf32> to vector<16xf32>
    %436 = vector.shape_cast %435 : vector<16xf32> to vector<16x1xf32>
    %cst_165 = arith.constant 3.200000e+01 : f32
    %437 = vector.broadcast %cst_165 : f32 to vector<16x1xf32>
    %438 = arith.divf %436, %437 : vector<16x1xf32>
    %439 = vector.broadcast %438 : vector<16x1xf32> to vector<16x32xf32>
    %440 = arith.subf %434, %439 : vector<16x32xf32>
    %441 = arith.mulf %440, %440 : vector<16x32xf32>
    %cst_166 = arith.constant dense<0.000000e+00> : vector<16xf32>
    %442 = vector.multi_reduction <add>, %441, %cst_166 [1] : vector<16x32xf32> to vector<16xf32>
    %443 = vector.shape_cast %442 : vector<16xf32> to vector<16x1xf32>
    %cst_167 = arith.constant 3.200000e+01 : f32
    %444 = vector.broadcast %cst_167 : f32 to vector<16x1xf32>
    %445 = arith.divf %443, %444 : vector<16x1xf32>
    %cst_168 = arith.constant 9.99999974E-6 : f32
    %446 = vector.broadcast %cst_168 : f32 to vector<16x1xf32>
    %447 = arith.addf %445, %446 : vector<16x1xf32>
    %448 = math.rsqrt %447 : vector<16x1xf32>
    %449 = vector.broadcast %448 : vector<16x1xf32> to vector<16x32xf32>
    %450 = arith.mulf %440, %449 : vector<16x32xf32>
    %c16_169 = arith.constant 16 : index
    %c0_170 = arith.constant 0 : index
    %451 = vector.load %arg4[%c16_169, %c0_170] : memref<24x96xf32, #tpu.memory_space<vmem>>, vector<1x32xf32>
    %452 = vector.broadcast %451 : vector<1x32xf32> to vector<16x32xf32>
    %453 = arith.mulf %450, %452 : vector<16x32xf32>
    %c17 = arith.constant 17 : index
    %c0_171 = arith.constant 0 : index
    %454 = vector.load %arg4[%c17, %c0_171] : memref<24x96xf32, #tpu.memory_space<vmem>>, vector<1x32xf32>
    %455 = vector.broadcast %454 : vector<1x32xf32> to vector<16x32xf32>
    %456 = arith.addf %453, %455 : vector<16x32xf32>
    %c336 = arith.constant 336 : index
    %c0_172 = arith.constant 0 : index
    %457 = vector.load %arg3[%c336, %c0_172] : memref<384x96xf32, #tpu.memory_space<vmem>>, vector<32x6xf32>
    %cst_173 = arith.constant dense<0.000000e+00> : vector<16x6xf32>
    %458 = tpu.matmul %456, %457, %cst_173 {dimension_numbers = #tpu.dot_dimension_numbers<[1], [0], [0], [1], [0, 0, 1, 1], [], []>} : vector<16x32xf32>, vector<32x6xf32>, vector<16x6xf32> -> vector<16x6xf32>
    %c18 = arith.constant 18 : index
    %c0_174 = arith.constant 0 : index
    %459 = vector.load %arg4[%c18, %c0_174] : memref<24x96xf32, #tpu.memory_space<vmem>>, vector<1x6xf32>
    %460 = vector.broadcast %459 : vector<1x6xf32> to vector<16x6xf32>
    %461 = arith.addf %458, %460 : vector<16x6xf32>
    %c368 = arith.constant 368 : index
    %c0_175 = arith.constant 0 : index
    %462 = vector.load %arg3[%c368, %c0_175] : memref<384x96xf32, #tpu.memory_space<vmem>>, vector<10x6xf32>
    %cst_176 = arith.constant dense<0.000000e+00> : vector<16x6xf32>
    %463 = tpu.matmul %3, %462, %cst_176 {dimension_numbers = #tpu.dot_dimension_numbers<[1], [0], [0], [1], [0, 0, 1, 1], [], []>} : vector<16x10xf32>, vector<10x6xf32>, vector<16x6xf32> -> vector<16x6xf32>
    %464 = arith.addf %461, %463 : vector<16x6xf32>
    %465 = vector.extract_strided_slice %464 {offsets = [0, 0], sizes = [8, 6], strides = [1, 1]} : vector<16x6xf32> to vector<8x6xf32>
    %466 = vector.extract_strided_slice %464 {offsets = [8, 0], sizes = [8, 6], strides = [1, 1]} : vector<16x6xf32> to vector<8x6xf32>
    %467 = tpu.concatenate %465, %466 in 1 : vector<8x6xf32>, vector<8x6xf32> -> vector<8x12xf32>
    %c0_177 = arith.constant 0 : index
    %c0_178 = arith.constant 0 : index
    %468 = vector.load %arg5[%c0_177, %c0_178] : memref<8x12xf32, #tpu.memory_space<vmem>>, vector<8x12xf32>
    tpu.vector_store %arg5[%c0_177, %c0_178], %467 {strides = array<i32>} : memref<8x12xf32, #tpu.memory_space<vmem>>, vector<8x12xf32>,
    return
  }
}

</mosaic_0001>

<bundles_post_ra>
// kernel: transformer_model_forward.1
= control target key start
LH: loop header
LB: loop body
LE: loop exit
PB: predicated region body
PF: predicated region fallthrough
CT: control target
= control target key end

     0   :  { %vm32_vm0 = vcmask 1041408   ;;  %vm27_vm1 = vcmask 80896   ;;  %s2227_s28 = smov 118   ;;  %vm65_vm2 = vcmask 261120   ;;  %s2228_s12 = smov 64   ;;  %vm100_vm3 = vcmask 64512   ;;  %s2879_s3 = inlined_call_operand.vmem [shape: f32[384,96], index: 3, kind: input, shape index: {}]   ;;  %s2880_s0 = inlined_call_operand.vmem [shape: f32[8,20], index: 0, kind: input, shape index: {}]   ;;  %s2881_s4 = inlined_call_operand.vmem [shape: f32[24,96], index: 4, kind: input, shape index: {}]   ;;  %s2882_s1 = inlined_call_operand.vmem [shape: f32[8,32], index: 1, kind: input, shape index: {}]   ;;  %s2883_s2 = inlined_call_operand.vmem [shape: f32[4,8,8], index: 2, kind: input, shape index: {}]   ;;  %s2884_s5 = inlined_call_operand.vmem [shape: f32[8,12], index: 5, kind: output, shape index: {}]  }
   0x1   :  { %v26_v0 = vld [vmem:[%s2879_s3 + $0x8] sm:$0x3]  ;;  %v25_v1 = vld [vmem:[%s2879_s3] sm:$0xff]  ;;  %v60_v5 = vld [vmem:[%s2879_s3 + $0x18] sm:$0xff]  ;;  %s2230_s13 = smov 88   ;;  %s2231_s14 = smov 120  }
   0x2   :  { %2027 = vmatpush.msk.msra.mxu0 %vm32_vm0, %v26_v0  ;;  %v20_v2 = vld [vmem:[%s2880_s0] sm:$0xff]  ;;  %v62_v3 = vld [vmem:[%s2879_s3 + $0x28] sm:$0xff]  ;;  %2102 = vmatpush.msk.msra.mxu2 %vm32_vm0, %v26_v0  ;;  %v59_v6 = vld [vmem:[%s2879_s3 + $0x10] sm:$0xff]  ;;  %s2232_s15 = smov 56   ;;  %s2233_s16 = smov 72  }
   0x3   :  { %v61_v4 = vld [vmem:[%s2879_s3 + $0x20] sm:$0xff]  ;;  %84 = vmatpush.msra.mxu1 %v62_v3  ;;  %22 = vrot.lane.b32.xlu0 %v20_v2, %s2227_s28  ;;  %s2234_s17 = smov 112   ;;  %s2235_s18 = smov 104   ;;  %v2354_v45 = vld [vmem:[%s2883_s2 + $0x8] sm:$0xff] }
   0x4   :  { %51 = vmatpush.msra.mxu0 %v25_v1  ;;  %2103 = vmatpush.msra.mxu2 %v25_v1  ;;  %v24_v7 = vld [vmem:[%s2882_s1] sm:$0xff]  ;;  %s2229_s1 = smov 96   ;;  %s2236_s23 = smov 80  }
   0x5   :  { %2028 = vmatmul.msk.f32.vlgmr.msra.gmra.mxu0 %vm27_vm1, %v20_v2  ;;  %85 = vmatpush.msra.mxu1 %v61_v4  ;;  %v2308_v10 = vld [vmem:[%s2881_s4] ss:$0 sm:$0xff]  ;;  %s2237_s26 = smov 40   ;;  %s2238_s27 = smov 8  }
   0x6   :  { %v2342_v23 = vld [vmem:[%s2883_s2] sm:$0xff]  ;;  %s2239_s30 = smov 48   ;;  %s2241_s6 = smov 24  }
   0x7   :  { %86 = vmatpush.msra.mxu1 %v60_v5  ;;  %v2368_v5 = vld [vmem:[%s2883_s2 + $0x10] sm:$0xff] }
   0x9   :  { %87 = vmatpush.msra.mxu1 %v59_v6 }
  0x75   :  { %v2327_v14 = vpop.permute.xlu0 %22 }
  0x76   :  { %2029 = vmatmul.msk.f32.vlgmr.msra.gmra.mxu2 %vm27_vm1, %v2327_v14 }
  0x82   :  { %v53_v8 = vpop.f32.mrf.mxu0 }
  0x83   :  { %v2301_v9 = vadd.f32 %v53_v8, %v24_v7 }
  0x85   :  { %2030 = vmatmul.msk.f32.vlgmr.msra.gmra.mxu1 %vm65_vm2, %v2301_v9 }
  0xf9   :  { %v56_v21 = vpop.f32.mrf.mxu2 }
  0xfa   :  { %v2335_v22 = vadd.f32 %v56_v21, %v24_v7 }
  0xfc   :  { %2031 = vmatmul.msk.f32.gmra.mxu1 %vm65_vm2, %v2335_v22 }
 0x102   :  { %v89_v11 = vpop.f32.mrf.mxu1 }
 0x103   :  { %v2311_v12 = vadd.f32 %v2308_v10, %v89_v11 }
 0x105   :  { %150 = vrot.lane.b32.xlu2 %v2311_v12, %s2228_s12  ;;  %98 = vrot.lane.b32.xlu0 %v2311_v12, %s2229_s1  ;;  %v95_v13 = vmul.f32 0.35355338, %v2311_v12 }
 0x10d   :  { %180 = vrot.lane.b32.xlu2 %v2311_v12, %s2230_s13  ;;  %178 = vrot.lane.b32.xlu0 %v95_v13, %s2231_s14 }
 0x115   :  { %230 = vrot.lane.b32.xlu0 %v2311_v12, %s2232_s15 }
 0x11d   :  { %340 = vrot.lane.b32.xlu0 %v2311_v12, %s2233_s16 }
 0x125   :  { %258 = vrot.lane.b32.xlu0 %v95_v13, %s2234_s17 }
 0x12d   :  { %338 = vrot.lane.b32.xlu0 %v95_v13, %s2235_s18 }
 0x15f   :  { %v151_v15 = vpop.permute.xlu2 %150 }
 0x160   :  { %171 = vmatpush.msra.mxu3 %v151_v15 }
 0x167   :  { %v181_v16 = vpop.permute.xlu2 %180 }
 0x168   :  { %2036 = vmatpush.xpose.msk.msrb.mxu3 %vm100_vm3, %v181_v16 }
 0x177   :  { %v99_v17 = vpop.permute.xlu0 %98 }
 0x178   :  { %2032 = vmatpush.xpose.msk.msrb.mxu2 %vm100_vm3, %v99_v17 }
 0x179   :  { %v92_v11 = vpop.f32.mrf.mxu1 }
 0x17b   :  { %2033 = vmatmul.msk.f32.vlgmr.msrb.gmra.mxu2 %vm100_vm3, %v95_v13  ;;  %v2375_v13 = vadd.f32 %v2308_v10, %v92_v11 }
 0x17f   :  { %v179_v18 = vpop.permute.xlu0 %178 }
 0x187   :  { %v231_v19 = vpop.permute.xlu0 %230 }
 0x188   :  { %251 = vmatpush.msra.mxu2 %v231_v19  ;;  %v2383_v19 = vld [vmem:[%s2883_s2 + $0x18] sm:$0xff]  ;;  %s2240_s2 = smov 16  }
 0x18f   :  { %v341_v20 = vpop.permute.xlu0 %340 }
 0x190   :  { %2044 = vmatpush.xpose.msk.msrb.mxu2 %vm100_vm3, %v341_v20 }
 0x197   :  { %v259_v55 = vpop.permute.xlu0 %258 }
 0x19f   :  { %v339_v4 = vpop.permute.xlu0 %338 }
 0x1fe   :  { %v123_v24 = vpop.f32.mrf.mxu2 }
 0x1ff   :  { %v124_v25 = vadd.f32 %v123_v24, %v2342_v23 }
 0x201   :  { %v126_v26 = vsel %vm100_vm3, %v124_v25, -inf }
 0x202   :  { %127 = vmax.xlane.f32.xlu1 %v126_v26 }
 0x275   :  { %v128_v27 = vpop.xlane.xlu1 %127 }
 0x276   :  { %v129_v28 = vsub.f32 %v124_v25, %v128_v27  ;;  %v433_v27 = vmul.f32 0.35355338, %v2375_v13 }
 0x278   :  { %v130_v29 = vmul.f32 1.442695, %v129_v28 }
 0x27a   :  { %2140 = vpow2.f32 %v130_v29 }
 0x280   :  { %v2141_v30 = vpop.eup %2140 }
 0x281   :  { %v132_v31 = vsel %vm100_vm3, %v2141_v30, 0.0 }
 0x282   :  { %133 = vadd.xlane.f32.xlu1 %v132_v31 }
 0x2f5   :  { %v134_v32 = vpop.xlane.xlu1 %133 }
 0x2f6   :  { %2142 = vrcp.f32 %v134_v32  ;;  %v146_v36 = vand.u32 2147483648, %v134_v32  ;;  %v144_v38 = vand.u32 2147483647, %v134_v32  ;;  %vm140_vm5 = vweird.f32 %v134_v32 }
 0x2f8   :  { %v147_v40 = vor.u32 1.1754944e-38, %v146_v36  ;;  %vm145_vm7 = vcmp.eq.f32.partialorder %v144_v38, 8.507059e+37 }
 0x2fc   :  { %v2143_v33 = vpop.eup %2142 }
 0x2fd   :  { %v136_v34 = vmul.f32 %v2143_v33, %v134_v32  ;;  %vm141_vm4 = vweird.f32 %v2143_v33 }
 0x2fe   :  { %vm142_vm6 = vmor %vm140_vm5, %vm141_vm4 }
 0x2ff   :  { %v137_v35 = vsub.f32 1.0, %v136_v34 }
 0x301   :  { %v138_v37 = vmul.f32 %v2143_v33, %v137_v35 }
 0x303   :  { %v139_v39 = vadd.f32 %v2143_v33, %v138_v37 }
 0x305   :  { %v143_v41 = vsel %vm142_vm6, %v2143_v33, %v139_v39 }
 0x306   :  { %v148_v42 = vsel %vm145_vm7, %v147_v40, %v143_v41 }
 0x307   :  { %v149_v43 = vmul.f32 %v2141_v30, %v148_v42 }
 0x309   :  { %2034 = vmatmul.msk.f32.vlgmr.msra.gmra.mxu3 %vm100_vm3, %v149_v43 }
 0x311   :  { %2037 = vmatmul.msk.f32.vlgmr.msrb.gmra.mxu3 %vm100_vm3, %v179_v18 }
 0x38c   :  { %v2349_v44 = vpop.f32.mrf.mxu3 }
 0x394   :  { %v203_v46 = vpop.f32.mrf.mxu3 }
 0x395   :  { %v204_v47 = vadd.f32 %v2354_v45, %v203_v46 }
 0x397   :  { %v206_v48 = vsel %vm100_vm3, %v204_v47, -inf }
 0x398   :  { %207 = vmax.xlane.f32.xlu1 %v206_v48 }
 0x3b1   :  { %260 = vrot.lane.b32.xlu1 %v2311_v12, %s2236_s23 }
 0x40b   :  { %v208_v49 = vpop.xlane.xlu1 %207 }
 0x40c   :  { %v209_v50 = vsub.f32 %v204_v47, %v208_v49 }
 0x40e   :  { %v210_v51 = vmul.f32 1.442695, %v209_v50 }
 0x410   :  { %2144 = vpow2.f32 %v210_v51 }
 0x416   :  { %v2145_v52 = vpop.eup %2144 }
 0x417   :  { %v212_v53 = vsel %vm100_vm3, %v2145_v52, 0.0 }
 0x418   :  { %213 = vadd.xlane.f32.xlu2 %v212_v53 }
 0x423   :  { %v261_v54 = vpop.permute.xlu1 %260 }
 0x424   :  { %2040 = vmatpush.xpose.msk.msra.mxu3 %vm100_vm3, %v261_v54 }
 0x427   :  { %2041 = vmatmul.msk.f32.vlgmr.msra.gmra.mxu3 %vm100_vm3, %v259_v55 }
 0x48b   :  { %v214_v56 = vpop.xlane.xlu2 %213 }
 0x48c   :  { %2146 = vrcp.f32 %v214_v56  ;;  %v226_v60 = vand.u32 2147483648, %v214_v56  ;;  %v224_v62 = vand.u32 2147483647, %v214_v56  ;;  %vm220_vm9 = vweird.f32 %v214_v56 }
 0x48e   :  { %v227_v0 = vor.u32 1.1754944e-38, %v226_v60  ;;  %vm225_vm11 = vcmp.eq.f32.partialorder %v224_v62, 8.507059e+37 }
 0x492   :  { %v2147_v57 = vpop.eup %2146 }
 0x493   :  { %v216_v58 = vmul.f32 %v2147_v57, %v214_v56  ;;  %vm221_vm8 = vweird.f32 %v2147_v57 }
 0x494   :  { %vm222_vm10 = vmor %vm220_vm9, %vm221_vm8  ;;  %vm429_vm8 = vcmask 130048   ;;  %vm431_vm9 = vcmask 195584  }
 0x495   :  { %v217_v59 = vsub.f32 1.0, %v216_v58 }
 0x497   :  { %v218_v61 = vmul.f32 %v2147_v57, %v217_v59 }
 0x499   :  { %v219_v63 = vadd.f32 %v2147_v57, %v218_v61 }
 0x49b   :  { %v223_v1 = vsel %vm222_vm10, %v2147_v57, %v219_v63 }
 0x49c   :  { %v228_v2 = vsel %vm225_vm11, %v227_v0, %v223_v1 }
 0x49d   :  { %v229_v3 = vmul.f32 %v2145_v52, %v228_v2 }
 0x49f   :  { %2038 = vmatmul.msk.f32.vlgmr.msra.gmra.mxu2 %vm100_vm3, %v229_v3 }
 0x4a7   :  { %2045 = vmatmul.msk.f32.vlgmr.msrb.gmra.mxu2 %vm100_vm3, %v339_v4 }
 0x4aa   :  { %v283_v6 = vpop.f32.mrf.mxu3 }
 0x4ab   :  { %v284_v7 = vadd.f32 %v2368_v5, %v283_v6 }
 0x4ad   :  { %v286_v8 = vsel %vm100_vm3, %v284_v7, -inf }
 0x4ae   :  { %287 = vmax.xlane.f32.xlu1 %v286_v8 }
 0x4c7   :  { %390 = vrot.lane.b32.xlu1 %v2311_v12, %s2237_s26 }
 0x4cf   :  { %670 = vrot.lane.b32.xlu1 %v2375_v13, %s2233_s16 }
 0x521   :  { %v288_v15 = vpop.xlane.xlu1 %287 }
 0x522   :  { %v289_v16 = vsub.f32 %v284_v7, %v288_v15  ;;  %v253_v17 = vpop.f32.mrf.mxu2 }
 0x523   :  { %417 = vrot.lane.b32.xlu1 %v253_v17, %s2238_s27 }
 0x524   :  { %v290_v18 = vmul.f32 1.442695, %v289_v16 }
 0x526   :  { %2148 = vpow2.f32 %v290_v18 }
 0x52a   :  { %v363_v20 = vpop.f32.mrf.mxu2 }
 0x52b   :  { %v364_v10 = vadd.f32 %v2383_v19, %v363_v20 }
 0x52c   :  { %v2149_v21 = vpop.eup %2148 }
 0x52d   :  { %v366_v24 = vsel %vm100_vm3, %v364_v10, -inf  ;;  %v292_v25 = vsel %vm100_vm3, %v2149_v21, 0.0 }
 0x52e   :  { %367 = vmax.xlane.f32.xlu0 %v366_v24  ;;  %293 = vadd.xlane.f32.xlu2 %v292_v25 }
 0x539   :  { %v391_v26 = vpop.permute.xlu1 %390 }
 0x53a   :  { %411 = vmatpush.msrb.mxu1 %v391_v26 }
 0x541   :  { %v671_v49 = vpop.permute.xlu1 %670 }
 0x542   :  { %514 = vrot.lane.b32.xlu0 %v2375_v13, %s2230_s13 }
 0x546   :  { %310 = vrot.lane.b32.xlu2 %v2311_v12, %s2239_s30 }
 0x54a   :  { %590 = vrot.lane.b32.xlu0 %v433_v27, %s2234_s17 }
 0x54e   :  { %435 = vrot.lane.b32.xlu2 %v2375_v13, %s2229_s1 }
 0x556   :  { %512 = vrot.lane.b32.xlu2 %v433_v27, %s2231_s14 }
 0x55e   :  { %592 = vrot.lane.b32.xlu2 %v2375_v13, %s2236_s23 }
 0x595   :  { %v418_v15 = vpop.permute.xlu1 %417 }
 0x5a1   :  { %v368_v28 = vpop.xlane.xlu0 %367  ;;  %v294_v29 = vpop.xlane.xlu2 %293 }
 0x5a2   :  { %v369_v30 = vsub.f32 %v364_v10, %v368_v28  ;;  %2150 = vrcp.f32 %v294_v29  ;;  %v306_v36 = vand.u32 2147483648, %v294_v29  ;;  %v304_v38 = vand.u32 2147483647, %v294_v29 }
 0x5a3   :  { %vm300_vm13 = vweird.f32 %v294_v29 }
 0x5a4   :  { %v370_v31 = vmul.f32 1.442695, %v369_v30  ;;  %v307_v41 = vor.u32 1.1754944e-38, %v306_v36  ;;  %vm305_vm15 = vcmp.eq.f32.partialorder %v304_v38, 8.507059e+37 }
 0x5a6   :  { %2152 = vpow2.f32 %v370_v31 }
 0x5a8   :  { %v2151_v32 = vpop.eup %2150 }
 0x5a9   :  { %v296_v12 = vmul.f32 %v2151_v32, %v294_v29  ;;  %v311_v33 = vpop.permute.xlu2 %310  ;;  %vm301_vm12 = vweird.f32 %v2151_v32 }
 0x5aa   :  { %331 = vmatpush.msrb.mxu0 %v311_v33  ;;  %vm302_vm14 = vmor %vm300_vm13, %vm301_vm12  ;;  %v763_v33 = vld [vmem:[%s2879_s3 + $0x40] sm:$0xff] }
 0x5ab   :  { %v297_v34 = vsub.f32 1.0, %v296_v12  ;;  %v764_v12 = vld [vmem:[%s2879_s3 + $0x48] sm:$0xff] }
 0x5ac   :  { %v2153_v35 = vpop.eup %2152 }
 0x5ad   :  { %v298_v37 = vmul.f32 %v2151_v32, %v297_v34  ;;  %v372_v39 = vsel %vm100_vm3, %v2153_v35, 0.0  ;;  %v761_v34 = vld [vmem:[%s2879_s3 + $0x30] sm:$0xff] }
 0x5ae   :  { %373 = vadd.xlane.f32.xlu2 %v372_v39 }
 0x5af   :  { %v299_v40 = vadd.f32 %v2151_v32, %v298_v37 }
 0x5b1   :  { %v436_v42 = vpop.permute.xlu2 %435  ;;  %v303_v43 = vsel %vm302_vm14, %v2151_v32, %v299_v40 }
 0x5b2   :  { %2047 = vmatpush.xpose.msk.msrb.mxu3 %vm100_vm3, %v436_v42  ;;  %v308_v46 = vsel %vm305_vm15, %v307_v41, %v303_v43 }
 0x5b3   :  { %v309_v47 = vmul.f32 %v2149_v21, %v308_v46 }
 0x5b4   :  { %v515_v48 = vpop.permute.xlu0 %514 }
 0x5b5   :  { %2042 = vmatmul.msk.f32.vlgmr.msrb.gmra.mxu0 %vm100_vm3, %v309_v47  ;;  %2048 = vmatmul.msk.f32.vlgmr.msrb.gmra.mxu3 %vm100_vm3, %v433_v27 }
 0x5b6   :  { %2050 = vmatpush.xpose.msk.msra.mxu2 %vm100_vm3, %v515_v48 }
 0x5b9   :  { %v513_v50 = vpop.permute.xlu2 %512 }
 0x5ba   :  { %2056 = vmatpush.xpose.msk.msrb.mxu2 %vm100_vm3, %v671_v49 }
 0x5bb   :  { %2051 = vmatmul.msk.f32.vlgmr.msra.gmra.mxu2 %vm100_vm3, %v513_v50 }
 0x5bc   :  { %v591_v52 = vpop.permute.xlu0 %590 }
 0x5c1   :  { %v593_v51 = vpop.permute.xlu2 %592 }
 0x5c2   :  { %2053 = vmatpush.xpose.msk.msra.mxu3 %vm100_vm3, %v593_v51 }
 0x5c5   :  { %2054 = vmatmul.msk.f32.vlgmr.msra.gmra.mxu3 %vm100_vm3, %v591_v52 }
 0x5c6   :  { %668 = vrot.lane.b32.xlu2 %v433_v27, %s2235_s18  ;;  %785 = vmatpush.msrb.mxu3 %v764_v12 }
 0x5c8   :  { %786 = vmatpush.msrb.mxu3 %v763_v33 }
 0x621   :  { %v374_v53 = vpop.xlane.xlu2 %373 }
 0x622   :  { %2154 = vrcp.f32 %v374_v53  ;;  %v386_v58 = vand.u32 2147483648, %v374_v53  ;;  %v384_v60 = vand.u32 2147483647, %v374_v53  ;;  %vm380_vm5 = vweird.f32 %v374_v53 }
 0x624   :  { %v387_v62 = vor.u32 1.1754944e-38, %v386_v58  ;;  %vm385_vm7 = vcmp.eq.f32.partialorder %v384_v60, 8.507059e+37 }
 0x628   :  { %v2155_v54 = vpop.eup %2154 }
 0x629   :  { %v376_v55 = vmul.f32 %v2155_v54, %v374_v53  ;;  %v669_v56 = vpop.permute.xlu2 %668  ;;  %vm381_vm4 = vweird.f32 %v2155_v54 }
 0x62a   :  { %2057 = vmatmul.msk.f32.vlgmr.msrb.gmra.mxu2 %vm100_vm3, %v669_v56  ;;  %vm382_vm6 = vmor %vm380_vm5, %vm381_vm4 }
 0x62b   :  { %v377_v57 = vsub.f32 1.0, %v376_v55 }
 0x62d   :  { %v378_v59 = vmul.f32 %v2155_v54, %v377_v57 }
 0x62f   :  { %v379_v61 = vadd.f32 %v2155_v54, %v378_v59 }
 0x631   :  { %v383_v63 = vsel %vm382_vm6, %v2155_v54, %v379_v61 }
 0x632   :  { %v333_v0 = vpop.f32.mrf.mxu0  ;;  %v388_v1 = vsel %vm385_vm7, %v387_v62, %v383_v63 }
 0x633   :  { %421 = vrot.lane.b32.xlu0 %v333_v0, %s2240_s2  ;;  %v389_v2 = vmul.f32 %v2153_v35, %v388_v1  ;;  %v428_v35 = vsel %vm100_vm3, %v2349_v44, %v418_v15  ;;  %v2464_v0 = vld [vmem:[%s2881_s4 + $0x1] ss:$0 sm:$0xff] }
 0x635   :  { %2046 = vmatmul.msk.f32.vlgmr.msrb.gmra.mxu1 %vm100_vm3, %v389_v2 }
 0x638   :  { %v459_v3 = vpop.f32.mrf.mxu3 }
 0x639   :  { %v460_v4 = vadd.f32 %v459_v3, %v2342_v23 }
 0x63b   :  { %v462_v6 = vsel %vm100_vm3, %v460_v4, -inf }
 0x63c   :  { %463 = vmax.xlane.f32.xlu1 %v462_v6 }
 0x63e   :  { %v537_v7 = vpop.f32.mrf.mxu2 }
 0x63f   :  { %v538_v8 = vadd.f32 %v2354_v45, %v537_v7 }
 0x641   :  { %v540_v11 = vsel %vm100_vm3, %v538_v8, -inf }
 0x648   :  { %v615_v27 = vpop.f32.mrf.mxu3 }
 0x649   :  { %v616_v29 = vadd.f32 %v2368_v5, %v615_v27  ;;  %v762_v5 = vld [vmem:[%s2879_s3 + $0x38] sm:$0xff] }
 0x64a   :  { %787 = vmatpush.msrb.mxu3 %v762_v5 }
 0x64b   :  { %v618_v30 = vsel %vm100_vm3, %v616_v29, -inf }
 0x64c   :  { %788 = vmatpush.msrb.mxu3 %v761_v34 }
 0x65d   :  { %541 = vmax.xlane.f32.xlu0 %v540_v11 }
 0x6a5   :  { %v422_v25 = vpop.permute.xlu0 %421 }
 0x6a6   :  { %v430_v36 = vsel %vm429_vm8, %v428_v35, %v422_v25 }
 0x6ad   :  { %v693_v16 = vpop.f32.mrf.mxu2 }
 0x6ae   :  { %v694_v17 = vadd.f32 %v2383_v19, %v693_v16 }
 0x6af   :  { %v464_v18 = vpop.xlane.xlu1 %463 }
 0x6b0   :  { %v465_v20 = vsub.f32 %v460_v4, %v464_v18  ;;  %v696_v10 = vsel %vm100_vm3, %v694_v17, -inf }
 0x6b1   :  { %697 = vmax.xlane.f32.xlu1 %v696_v10 }
 0x6b2   :  { %v466_v21 = vmul.f32 1.442695, %v465_v20  ;;  %v413_v23 = vpop.f32.mrf.mxu1 }
 0x6b3   :  { %425 = vrot.lane.b32.xlu2 %v413_v23, %s2241_s6 }
 0x6b4   :  { %2156 = vpow2.f32 %v466_v21 }
 0x6ba   :  { %v2419_v24 = vpop.eup %2156 }
 0x6bb   :  { %v468_v45 = vsel %vm100_vm3, %v2419_v24, 0.0 }
 0x6bc   :  { %469 = vadd.xlane.f32.xlu0 %v468_v45 }
 0x6d0   :  { %v542_v26 = vpop.xlane.xlu0 %541 }
 0x6d1   :  { %v543_v19 = vsub.f32 %v538_v8, %v542_v26 }
 0x6d3   :  { %v544_v28 = vmul.f32 1.442695, %v543_v19 }
 0x6d5   :  { %2158 = vpow2.f32 %v544_v28 }
 0x6db   :  { %v2425_v31 = vpop.eup %2158 }
 0x6dc   :  { %619 = vmax.xlane.f32.xlu2 %v618_v30  ;;  %v546_v32 = vsel %vm100_vm3, %v2425_v31, 0.0 }
 0x6e4   :  { %547 = vadd.xlane.f32.xlu2 %v546_v32 }
 0x6fc   :  { %486 = vrot.lane.b32.xlu2 %v2375_v13, %s2228_s12 }
 0x704   :  { %720 = vrot.lane.b32.xlu2 %v2375_v13, %s2237_s26 }
 0x70d   :  { %v426_v37 = vpop.permute.xlu2 %425 }
 0x70e   :  { %v432_v38 = vsel %vm431_vm9, %v430_v36, %v426_v37 }
 0x70f   :  { %2059 = vmatmul.msk.f32.vlgmr.msrb.gmra.mxu3 %vm65_vm2, %v432_v38 }
 0x724   :  { %v698_v39 = vpop.xlane.xlu1 %697 }
 0x725   :  { %v699_v40 = vsub.f32 %v694_v17, %v698_v39 }
 0x727   :  { %v700_v41 = vmul.f32 1.442695, %v699_v40 }
 0x729   :  { %2160 = vpow2.f32 %v700_v41 }
 0x72f   :  { %v2450_v42 = vpop.eup %2160  ;;  %v470_v46 = vpop.xlane.xlu0 %469 }
 0x730   :  { %v702_v43 = vsel %vm100_vm3, %v2450_v42, 0.0  ;;  %2162 = vrcp.f32 %v470_v46  ;;  %v482_v54 = vand.u32 2147483648, %v470_v46  ;;  %vm476_vm11 = vweird.f32 %v470_v46 }
 0x731   :  { %703 = vadd.xlane.f32.xlu0 %v702_v43  ;;  %v480_v55 = vand.u32 2147483647, %v470_v46 }
 0x732   :  { %v483_v59 = vor.u32 1.1754944e-38, %v482_v54 }
 0x733   :  { %vm481_vm13 = vcmp.eq.f32.partialorder %v480_v55, 8.507059e+37 }
 0x736   :  { %v2163_v44 = vpop.eup %2162 }
 0x737   :  { %v472_v47 = vmul.f32 %v2163_v44, %v470_v46  ;;  %vm477_vm10 = vweird.f32 %v2163_v44 }
 0x738   :  { %vm478_vm12 = vmor %vm476_vm11, %vm477_vm10 }
 0x739   :  { %v473_v48 = vsub.f32 1.0, %v472_v47  ;;  %v2242_v47 = vmov 32.0  }
 0x73b   :  { %v474_v51 = vmul.f32 %v2163_v44, %v473_v48 }
 0x73d   :  { %v475_v53 = vadd.f32 %v2163_v44, %v474_v51 }
 0x73f   :  { %v479_v57 = vsel %vm478_vm12, %v2163_v44, %v475_v53 }
 0x740   :  { %v484_v61 = vsel %vm481_vm13, %v483_v59, %v479_v57 }
 0x741   :  { %v485_v63 = vmul.f32 %v2419_v24, %v484_v61  ;;  %v860_v61 = vld [vmem:[%s2879_s3 + $0x68] sm:$0xff] }
 0x745   :  { %642 = vrot.lane.b32.xlu0 %v2375_v13, %s2239_s30 }
 0x74f   :  { %v620_v49 = vpop.xlane.xlu2 %619 }
 0x750   :  { %v621_v50 = vsub.f32 %v616_v29, %v620_v49 }
 0x752   :  { %v622_v52 = vmul.f32 1.442695, %v621_v50 }
 0x754   :  { %2164 = vpow2.f32 %v622_v52 }
 0x757   :  { %v548_v56 = vpop.xlane.xlu2 %547 }
 0x758   :  { %2166 = vrcp.f32 %v548_v56  ;;  %v560_v19 = vand.u32 2147483648, %v548_v56  ;;  %vm554_vm6 = vweird.f32 %v548_v56  ;;  %v558_v28 = vand.u32 2147483647, %v548_v56 }
 0x75a   :  { %v2165_v58 = vpop.eup %2164  ;;  %v561_v5 = vor.u32 1.1754944e-38, %v560_v19  ;;  %vm559_vm11 = vcmp.eq.f32.partialorder %v558_v28, 8.507059e+37 }
 0x75b   :  { %v624_v60 = vsel %vm100_vm3, %v2165_v58, 0.0 }
 0x75c   :  { %625 = vadd.xlane.f32.xlu1 %v624_v60 }
 0x75f   :  { %v487_v62 = vpop.permute.xlu2 %486 }
 0x760   :  { %507 = vmatpush.msra.mxu0 %v487_v62  ;;  %v859_v62 = vld [vmem:[%s2879_s3 + $0x60] sm:$0xff] }
 0x761   :  { %2049 = vmatmul.msk.f32.vlgmr.msra.gmra.mxu0 %vm100_vm3, %v485_v63  ;;  %v858_v63 = vld [vmem:[%s2879_s3 + $0x58] sm:$0xff] }
 0x767   :  { %v721_v40 = vpop.permute.xlu2 %720 }
 0x775   :  { %564 = vrot.lane.b32.xlu1 %v2375_v13, %s2232_s15  ;;  %v2167_v13 = vpop.eup %2166 }
 0x776   :  { %v550_v11 = vmul.f32 %v2167_v13, %v548_v56  ;;  %vm555_vm15 = vweird.f32 %v2167_v13 }
 0x777   :  { %vm556_vm10 = vmor %vm554_vm6, %vm555_vm15 }
 0x778   :  { %v551_v16 = vsub.f32 1.0, %v550_v11 }
 0x77a   :  { %v552_v20 = vmul.f32 %v2167_v13, %v551_v16  ;;  %v2501_v16 = vld [vmem:[%s2881_s4 + $0x2] ss:$0 sm:$0xff] }
 0x77c   :  { %v553_v45 = vadd.f32 %v2167_v13, %v552_v20  ;;  %v2506_v20 = vld [vmem:[%s2881_s4 + $0x3] ss:$0 sm:$0xff] }
 0x77e   :  { %v557_v32 = vsel %vm556_vm10, %v2167_v13, %v553_v45  ;;  %v898_v45 = vld [vmem:[%s2879_s3 + $0x90] sm:$0xff]  ;;  %vm904_vm10 = vcmask 523264  }
 0x77f   :  { %v562_v34 = vsel %vm559_vm11, %v561_v5, %v557_v32  ;;  %v896_v32 = vld [vmem:[%s2879_s3 + $0x80] sm:$0xff] }
 0x780   :  { %v563_v39 = vmul.f32 %v2425_v31, %v562_v34  ;;  %v2542_v5 = vld [vmem:[%s2881_s4 + $0x4] ss:$0 sm:$0xff] }
 0x792   :  { %v790_v1 = vpop.f32.mrf.mxu3 }
 0x793   :  { %v791_v2 = vadd.f32 %v2464_v0, %v790_v1  ;;  %v857_v1 = vld [vmem:[%s2879_s3 + $0x50] sm:$0xff] }
 0x795   :  { %v2468_v3 = vadd.f32 %v791_v2, %v2301_v9 }
 0x797   :  { %v798_v4 = vsel %vm65_vm2, %v2468_v3, 0.0 }
 0x798   :  { %799 = vadd.xlane.f32.xlu0 %v798_v4 }
 0x7a4   :  { %v704_v6 = vpop.xlane.xlu0 %703 }
 0x7a5   :  { %2168 = vrcp.f32 %v704_v6  ;;  %v716_v36 = vand.u32 2147483648, %v704_v6  ;;  %vm710_vm13 = vweird.f32 %v704_v6  ;;  %v714_v37 = vand.u32 2147483647, %v704_v6 }
 0x7a7   :  { %v717_v43 = vor.u32 1.1754944e-38, %v716_v36  ;;  %vm715_vm15 = vcmp.eq.f32.partialorder %v714_v37, 8.507059e+37 }
 0x7ab   :  { %v2169_v15 = vpop.eup %2168 }
 0x7ac   :  { %v706_v9 = vmul.f32 %v2169_v15, %v704_v6  ;;  %vm711_vm12 = vweird.f32 %v2169_v15 }
 0x7ae   :  { %v707_v25 = vsub.f32 1.0, %v706_v9 }
 0x7b0   :  { %v708_v12 = vmul.f32 %v2169_v15, %v707_v25  ;;  %v897_v25 = vld [vmem:[%s2879_s3 + $0x88] sm:$0xff] }
 0x7b2   :  { %v709_v35 = vadd.f32 %v2169_v15, %v708_v12  ;;  %v895_v12 = vld [vmem:[%s2879_s3 + $0x78] sm:$0xff] }
 0x7b7   :  { %v643_v7 = vpop.permute.xlu0 %642 }
 0x7b8   :  { %663 = vmatpush.msrb.mxu0 %v643_v7 }
 0x7ba   :  { %881 = vmatpush.msra.mxu0 %v860_v61 }
 0x7bc   :  { %882 = vmatpush.msra.mxu0 %v859_v62 }
 0x7be   :  { %883 = vmatpush.msra.mxu0 %v858_v63 }
 0x7c0   :  { %884 = vmatpush.msra.mxu0 %v857_v1 }
 0x7cf   :  { %v626_v8 = vpop.xlane.xlu1 %625 }
 0x7d0   :  { %2170 = vrcp.f32 %v626_v8  ;;  %v638_v21 = vand.u32 2147483648, %v626_v8  ;;  %v636_v24 = vand.u32 2147483647, %v626_v8  ;;  %vm632_vm4 = vweird.f32 %v626_v8 }
 0x7d1   :  { %2172 = vrcp.f32 %v2242_v47 }
 0x7d2   :  { %v639_v27 = vor.u32 1.1754944e-38, %v638_v21  ;;  %vm637_vm7 = vcmp.eq.f32.partialorder %v636_v24, 8.507059e+37  ;;  %v901_v21 = vld [vmem:[%s2879_s3 + $0xa8] sm:$0xff]  ;;  %v899_v24 = vld [vmem:[%s2879_s3 + $0x98] sm:$0xff] }
 0x7d3   :  { %919 = vmatpush.msra.mxu2 %v901_v21 }
 0x7d6   :  { %v2171_v17 = vpop.eup %2170 }
 0x7d7   :  { %v628_v18 = vmul.f32 %v2171_v17, %v626_v8  ;;  %vm633_vm14 = vweird.f32 %v2171_v17  ;;  %v2173_v48 = vpop.eup %2172 }
 0x7d8   :  { %vm634_vm5 = vmor %vm632_vm4, %vm633_vm14  ;;  %v805_v49 = vmul.f32 32.0, %v2173_v48  ;;  %vm809_vm4 = vweird.f32 %v2173_v48 }
 0x7d9   :  { %v629_v10 = vsub.f32 1.0, %v628_v18  ;;  %vm712_vm14 = vmor %vm710_vm13, %vm711_vm12 }
 0x7da   :  { %v713_v41 = vsel %vm712_vm14, %v2169_v15, %v709_v35  ;;  %v806_v50 = vsub.f32 1.0, %v805_v49 }
 0x7db   :  { %v630_v23 = vmul.f32 %v2171_v17, %v629_v10  ;;  %v718_v46 = vsel %vm715_vm15, %v717_v43, %v713_v41  ;;  %v2552_v41 = vld [vmem:[%s2881_s4 + $0x5] ss:$0 sm:$0xff] }
 0x7dc   :  { %v719_v44 = vmul.f32 %v2450_v42, %v718_v46  ;;  %v807_v31 = vmul.f32 %v2173_v48, %v806_v50 }
 0x7dd   :  { %v631_v26 = vadd.f32 %v2171_v17, %v630_v23  ;;  %v900_v23 = vld [vmem:[%s2879_s3 + $0xa0] sm:$0xff] }
 0x7de   :  { %v808_v51 = vadd.f32 %v2173_v48, %v807_v31  ;;  %v509_v57 = vpop.f32.mrf.mxu0  ;;  %920 = vmatpush.msra.mxu2 %v900_v23  ;;  %v2127_v23 = vld [vmem:[%s2881_s4 + $0x6] ss:$0 sm:$0xff] }
 0x7df   :  { %v635_v29 = vsel %vm634_vm5, %v2171_v17, %v631_v26 }
 0x7e0   :  { %v640_v30 = vsel %vm637_vm7, %v639_v27, %v635_v29  ;;  %v2477_v52 = vsel %vm809_vm4, %v2173_v48, %v808_v51  ;;  %921 = vmatpush.msra.mxu2 %v899_v24 }
 0x7e1   :  { %v641_v33 = vmul.f32 %v2165_v58, %v640_v30 }
 0x7e2   :  { %922 = vmatpush.msra.mxu2 %v898_v45 }
 0x7e3   :  { %2055 = vmatmul.msk.f32.vlgmr.msrb.gmra.mxu0 %vm100_vm3, %v641_v33  ;;  %v894_v33 = vld [vmem:[%s2879_s3 + $0x70] sm:$0xff] }
 0x7e4   :  { %923 = vmatpush.msra.mxu2 %v897_v25  ;;  %v2128_v25 = vld [vmem:[%s2881_s4 + $0x7] ss:$0 sm:$0xff] }
 0x7e6   :  { %924 = vmatpush.msra.mxu2 %v896_v32 }
 0x7e7   :  { %v565_v38 = vpop.permute.xlu1 %564 }
 0x7e8   :  { %585 = vmatpush.msra.mxu1 %v565_v38  ;;  %925 = vmatpush.msra.mxu2 %v895_v12 }
 0x7e9   :  { %2052 = vmatmul.msk.f32.vlgmr.msra.gmra.mxu1 %vm100_vm3, %v563_v39 }
 0x7ea   :  { %741 = vmatpush.msrb.mxu1 %v721_v40  ;;  %926 = vmatpush.msra.mxu2 %v894_v33 }
 0x7f1   :  { %2058 = vmatmul.msk.f32.vlgmr.msrb.gmra.mxu1 %vm100_vm3, %v719_v44 }
 0x80b   :  { %v800_v53 = vpop.xlane.xlu0 %799 }
 0x80c   :  { %v811_v54 = vmul.f32 %v2477_v52, %v800_v53 }
 0x80e   :  { %v813_v55 = vsub.f32 %v2468_v3, %v811_v54 }
 0x810   :  { %v815_v56 = vmul.f32 %v813_v55, %v813_v55 }
 0x812   :  { %v817_v42 = vsel %vm65_vm2, %v815_v56, 0.0 }
 0x813   :  { %818 = vadd.xlane.f32.xlu1 %v817_v42 }
 0x860   :  { %v665_v59 = vpop.f32.mrf.mxu0 }
 0x866   :  { %v587_v58 = vpop.f32.mrf.mxu1 }
 0x867   :  { %747 = vrot.lane.b32.xlu2 %v587_v58, %s2238_s27 }
 0x86e   :  { %v743_v60 = vpop.f32.mrf.mxu1 }
 0x86f   :  { %751 = vrot.lane.b32.xlu2 %v665_v59, %s2240_s2 }
 0x877   :  { %755 = vrot.lane.b32.xlu2 %v743_v60, %s2241_s6 }
 0x886   :  { %v819_v2 = vpop.xlane.xlu1 %818 }
 0x887   :  { %v823_v3 = vmul.f32 %v819_v2, %v2477_v52 }
 0x889   :  { %v825_v4 = vadd.f32 1e-05, %v823_v3 }
 0x88b   :  { %2174 = vrsqrt.f32 %v825_v4  ;;  %vm833_vm6 = vweird.f32 %v825_v4 }
 0x891   :  { %v2175_v6 = vpop.eup %2174 }
 0x892   :  { %v828_v7 = vmul.f32 %v2175_v6, %v825_v4  ;;  %vm834_vm5 = vweird.f32 %v2175_v6 }
 0x893   :  { %vm835_vm7 = vmor %vm833_vm6, %vm834_vm5 }
 0x894   :  { %v829_v13 = vmul.f32 %v2175_v6, %v828_v7  ;;  %v990_v7 = vld [vmem:[%s2879_s3 + $0xc0] sm:$0xff] }
 0x896   :  { %v830_v8 = vmul.f32 0.5, %v829_v13  ;;  %v989_v13 = vld [vmem:[%s2879_s3 + $0xb8] sm:$0xff] }
 0x898   :  { %v831_v11 = vsub.f32 1.5, %v830_v8  ;;  %v988_v8 = vld [vmem:[%s2879_s3 + $0xb0] sm:$0xff] }
 0x89a   :  { %v832_v15 = vmul.f32 %v2175_v6, %v831_v11 }
 0x89c   :  { %v836_v17 = vsel %vm835_vm7, %v2175_v6, %v832_v15  ;;  %v991_v6 = vld [vmem:[%s2879_s3 + $0xc8] sm:$0xff] }
 0x89d   :  { %v847_v18 = vmul.f32 %v836_v17, %v813_v55  ;;  %1012 = vmatpush.msra.mxu1 %v991_v6 }
 0x89f   :  { %v851_v9 = vmul.f32 %v2501_v16, %v847_v18  ;;  %1013 = vmatpush.msra.mxu1 %v990_v7 }
 0x8a1   :  { %v855_v10 = vadd.f32 %v2506_v20, %v851_v9  ;;  %1014 = vmatpush.msra.mxu1 %v989_v13 }
 0x8a3   :  { %2061 = vmatmul.msk.f32.vlgmr.msra.gmra.mxu0 %vm65_vm2, %v855_v10  ;;  %1015 = vmatpush.msra.mxu1 %v988_v8 }
 0x8c1   :  { %v748_v26 = vpop.permute.xlu2 %747 }
 0x8c2   :  { %v758_v27 = vsel %vm100_vm3, %v509_v57, %v748_v26 }
 0x8c9   :  { %v752_v19 = vpop.permute.xlu2 %751 }
 0x8ca   :  { %v759_v28 = vsel %vm429_vm8, %v758_v27, %v752_v19 }
 0x8d1   :  { %v756_v29 = vpop.permute.xlu2 %755 }
 0x8d2   :  { %v760_v30 = vsel %vm431_vm9, %v759_v28, %v756_v29 }
 0x8d3   :  { %2060 = vmatmul.msk.f32.gmra.mxu3 %vm65_vm2, %v760_v30  ;;  %v2129_v30 = vld [vmem:[%s2881_s4 + $0x8] ss:$0 sm:$0xff] }
 0x920   :  { %v886_v34 = vpop.f32.mrf.mxu0 }
 0x921   :  { %v887_v35 = vadd.f32 %v2542_v5, %v886_v34 }
 0x923   :  { %v892_v36 = vmax.f32 %v887_v35, 0.0 }
 0x925   :  { %2063 = vmatmul.msk.f32.vlgmr.msra.gmra.mxu2 %vm904_vm10, %v892_v36 }
 0x956   :  { %v793_v37 = vpop.f32.mrf.mxu3 }
 0x957   :  { %v794_v38 = vadd.f32 %v2464_v0, %v793_v37 }
 0x959   :  { %v797_v39 = vadd.f32 %v794_v38, %v2335_v22 }
 0x95b   :  { %v801_v40 = vsel %vm65_vm2, %v797_v39, 0.0 }
 0x95c   :  { %802 = vadd.xlane.f32.xlu2 %v801_v40 }
 0x9a8   :  { %v928_v43 = vpop.f32.mrf.mxu2 }
 0x9a9   :  { %v929_v46 = vadd.f32 %v2552_v41, %v928_v43 }
 0x9ab   :  { %v934_v44 = vadd.f32 %v929_v46, %v855_v10 }
 0x9ad   :  { %v936_v47 = vsel %vm65_vm2, %v934_v44, 0.0 }
 0x9ae   :  { %937 = vadd.xlane.f32.xlu1 %v936_v47 }
 0x9cf   :  { %v803_v48 = vpop.xlane.xlu2 %802 }
 0x9d0   :  { %v812_v0 = vmul.f32 %v2477_v52, %v803_v48 }
 0x9d2   :  { %v814_v49 = vsub.f32 %v797_v39, %v812_v0 }
 0x9d4   :  { %v816_v22 = vmul.f32 %v814_v49, %v814_v49 }
 0x9d6   :  { %v820_v50 = vsel %vm65_vm2, %v816_v22, 0.0 }
 0x9d7   :  { %821 = vadd.xlane.f32.xlu0 %v820_v50 }
 0xa21   :  { %v938_v31 = vpop.xlane.xlu1 %937 }
 0xa22   :  { %v942_v51 = vmul.f32 %v938_v31, %v2477_v52 }
 0xa24   :  { %v944_v53 = vsub.f32 %v934_v44, %v942_v51 }
 0xa26   :  { %v946_v54 = vmul.f32 %v944_v53, %v944_v53 }
 0xa28   :  { %v948_v55 = vsel %vm65_vm2, %v946_v54, 0.0 }
 0xa29   :  { %949 = vadd.xlane.f32.xlu0 %v948_v55 }
 0xa4a   :  { %v822_v56 = vpop.xlane.xlu0 %821 }
 0xa4b   :  { %v824_v42 = vmul.f32 %v822_v56, %v2477_v52 }
 0xa4d   :  { %v826_v57 = vadd.f32 1e-05, %v824_v42 }
 0xa4f   :  { %2176 = vrsqrt.f32 %v826_v57  ;;  %vm843_vm12 = vweird.f32 %v826_v57 }
 0xa55   :  { %v2177_v58 = vpop.eup %2176 }
 0xa56   :  { %v838_v59 = vmul.f32 %v2177_v58, %v826_v57  ;;  %vm844_vm11 = vweird.f32 %v2177_v58 }
 0xa57   :  { %vm845_vm13 = vmor %vm843_vm12, %vm844_vm11 }
 0xa58   :  { %v839_v60 = vmul.f32 %v2177_v58, %v838_v59 }
 0xa5a   :  { %v840_v61 = vmul.f32 0.5, %v839_v60 }
 0xa5c   :  { %v841_v62 = vsub.f32 1.5, %v840_v61 }
 0xa5e   :  { %v842_v63 = vmul.f32 %v2177_v58, %v841_v62 }
 0xa60   :  { %v846_v1 = vsel %vm845_vm13, %v2177_v58, %v842_v63 }
 0xa61   :  { %v848_v2 = vmul.f32 %v846_v1, %v814_v49 }
 0xa63   :  { %v852_v3 = vmul.f32 %v2501_v16, %v848_v2 }
 0xa65   :  { %v856_v4 = vadd.f32 %v2506_v20, %v852_v3 }
 0xa67   :  { %2062 = vmatmul.msk.f32.gmra.mxu0 %vm65_vm2, %v856_v4 }
 0xa9c   :  { %v950_v11 = vpop.xlane.xlu0 %949 }
 0xa9d   :  { %v954_v15 = vmul.f32 %v950_v11, %v2477_v52 }
 0xa9f   :  { %v956_v16 = vadd.f32 1e-05, %v954_v15 }
 0xaa1   :  { %2178 = vrsqrt.f32 %v956_v16  ;;  %vm964_vm15 = vweird.f32 %v956_v16 }
 0xaa7   :  { %v2179_v17 = vpop.eup %2178 }
 0xaa8   :  { %v959_v18 = vmul.f32 %v2179_v17, %v956_v16  ;;  %vm965_vm14 = vweird.f32 %v2179_v17 }
 0xaa9   :  { %vm966_vm4 = vmor %vm964_vm15, %vm965_vm14 }
 0xaaa   :  { %v960_v20 = vmul.f32 %v2179_v17, %v959_v18 }
 0xaac   :  { %v961_v9 = vmul.f32 0.5, %v960_v20 }
 0xaae   :  { %v962_v10 = vsub.f32 1.5, %v961_v9 }
 0xab0   :  { %v963_v21 = vmul.f32 %v2179_v17, %v962_v10 }
 0xab2   :  { %v967_v24 = vsel %vm966_vm4, %v2179_v17, %v963_v21 }
 0xab3   :  { %v978_v45 = vmul.f32 %v967_v24, %v944_v53 }
 0xab5   :  { %v982_v26 = vmul.f32 %v2127_v23, %v978_v45 }
 0xab7   :  { %v2583_v19 = vadd.f32 %v2128_v25, %v982_v26 }
 0xab9   :  { %2065 = vmatmul.msk.f32.vlgmr.msra.gmra.mxu1 %vm65_vm2, %v2583_v19 }
 0xae4   :  { %v889_v27 = vpop.f32.mrf.mxu0 }
 0xae5   :  { %v890_v28 = vadd.f32 %v2542_v5, %v889_v27 }
 0xae7   :  { %v893_v29 = vmax.f32 %v890_v28, 0.0 }
 0xae9   :  { %2064 = vmatmul.msk.f32.gmra.mxu2 %vm904_vm10, %v893_v29 }
 0xb36   :  { %v1017_v32 = vpop.f32.mrf.mxu1 }
 0xb37   :  { %v2592_v12 = vadd.f32 %v2129_v30, %v1017_v32 }
 0xb39   :  { %1025 = vrot.lane.b32.xlu1 %v2592_v12, %s2229_s1  ;;  %v1023_v33 = vmul.f32 0.35355338, %v2592_v12 }
 0xb41   :  { %1104 = vrot.lane.b32.xlu1 %v2592_v12, %s2230_s13 }
 0xb49   :  { %1182 = vrot.lane.b32.xlu1 %v2592_v12, %s2236_s23 }
 0xb51   :  { %1260 = vrot.lane.b32.xlu1 %v2592_v12, %s2233_s16 }
 0xb59   :  { %1258 = vrot.lane.b32.xlu1 %v1023_v33, %s2235_s18 }
 0xb6c   :  { %v931_v5 = vpop.f32.mrf.mxu2 }
 0xb6d   :  { %v932_v34 = vadd.f32 %v2552_v41, %v931_v5 }
 0xb6f   :  { %v935_v35 = vadd.f32 %v932_v34, %v856_v4 }
 0xb71   :  { %v939_v36 = vsel %vm65_vm2, %v935_v35, 0.0 }
 0xb72   :  { %940 = vadd.xlane.f32.xlu0 %v939_v36 }
 0xbab   :  { %v1026_v37 = vpop.permute.xlu1 %1025 }
 0xbac   :  { %2067 = vmatpush.xpose.msk.msra.mxu3 %vm100_vm3, %v1026_v37 }
 0xbaf   :  { %2068 = vmatmul.msk.f32.vlgmr.msra.gmra.mxu3 %vm100_vm3, %v1023_v33 }
 0xbb3   :  { %v1105_v38 = vpop.permute.xlu1 %1104 }
 0xbb4   :  { %2070 = vmatpush.xpose.msk.msrb.mxu1 %vm100_vm3, %v1105_v38 }
 0xbbb   :  { %v1183_v39 = vpop.permute.xlu1 %1182 }
 0xbc3   :  { %v1261_v40 = vpop.permute.xlu1 %1260 }
 0xbc4   :  { %2076 = vmatpush.xpose.msk.msra.mxu1 %vm100_vm3, %v1261_v40 }
 0xbcb   :  { %v1259_v61 = vpop.permute.xlu1 %1258 }
 0xbe5   :  { %v941_v43 = vpop.xlane.xlu0 %940 }
 0xbe6   :  { %v943_v46 = vmul.f32 %v941_v43, %v2477_v52 }
 0xbe8   :  { %v945_v41 = vsub.f32 %v935_v35, %v943_v46 }
 0xbea   :  { %v947_v44 = vmul.f32 %v945_v41, %v945_v41 }
 0xbec   :  { %v951_v47 = vsel %vm65_vm2, %v947_v44, 0.0 }
 0xbed   :  { %952 = vadd.xlane.f32.xlu0 %v951_v47 }
 0xc01   :  { %1102 = vrot.lane.b32.xlu0 %v1023_v33, %s2231_s14 }
 0xc09   :  { %1180 = vrot.lane.b32.xlu0 %v1023_v33, %s2234_s17 }
 0xc32   :  { %v1049_v48 = vpop.f32.mrf.mxu3 }
 0xc33   :  { %v1052_v0 = vsel %vm100_vm3, %v1049_v48, -inf }
 0xc34   :  { %1053 = vmax.xlane.f32.xlu2 %v1052_v0 }
 0xc4c   :  { %1076 = vrot.lane.b32.xlu2 %v2592_v12, %s2228_s12 }
 0xc60   :  { %v953_v49 = vpop.xlane.xlu0 %952 }
 0xc61   :  { %v955_v22 = vmul.f32 %v953_v49, %v2477_v52 }
 0xc63   :  { %v957_v50 = vadd.f32 1e-05, %v955_v22 }
 0xc65   :  { %2180 = vrsqrt.f32 %v957_v50  ;;  %vm974_vm6 = vweird.f32 %v957_v50 }
 0xc6b   :  { %v2181_v31 = vpop.eup %2180 }
 0xc6c   :  { %v969_v51 = vmul.f32 %v2181_v31, %v957_v50  ;;  %vm975_vm5 = vweird.f32 %v2181_v31 }
 0xc6d   :  { %vm976_vm7 = vmor %vm974_vm6, %vm975_vm5 }
 0xc6e   :  { %v970_v53 = vmul.f32 %v2181_v31, %v969_v51 }
 0xc70   :  { %v971_v54 = vmul.f32 0.5, %v970_v53 }
 0xc72   :  { %v972_v55 = vsub.f32 1.5, %v971_v54 }
 0xc73   :  { %v1103_v60 = vpop.permute.xlu0 %1102 }
 0xc74   :  { %v973_v56 = vmul.f32 %v2181_v31, %v972_v55 }
 0xc76   :  { %v977_v42 = vsel %vm976_vm7, %v2181_v31, %v973_v56 }
 0xc77   :  { %v979_v57 = vmul.f32 %v977_v42, %v945_v41 }
 0xc79   :  { %v983_v58 = vmul.f32 %v2127_v23, %v979_v57 }
 0xc7b   :  { %v2618_v59 = vadd.f32 %v2128_v25, %v983_v58  ;;  %v1181_v17 = vpop.permute.xlu0 %1180 }
 0xc7d   :  { %2066 = vmatmul.msk.f32.gmra.mxu1 %vm65_vm2, %v2618_v59 }
 0xc85   :  { %2071 = vmatmul.msk.f32.vlgmr.msrb.gmra.mxu1 %vm100_vm3, %v1103_v60 }
 0xc8d   :  { %2077 = vmatmul.msk.f32.vlgmr.msra.gmra.mxu1 %vm100_vm3, %v1259_v61 }
 0xca7   :  { %v1054_v62 = vpop.xlane.xlu2 %1053 }
 0xca8   :  { %v1055_v4 = vsub.f32 %v1049_v48, %v1054_v62 }
 0xcaa   :  { %v1056_v6 = vmul.f32 1.442695, %v1055_v4 }
 0xcac   :  { %2182 = vpow2.f32 %v1056_v6 }
 0xcaf   :  { %v1077_v63 = vpop.permute.xlu2 %1076 }
 0xcb0   :  { %1097 = vmatpush.msrb.mxu0 %v1077_v63 }
 0xcb2   :  { %2073 = vmatpush.xpose.msk.msra.mxu0 %vm100_vm3, %v1183_v39  ;;  %v2183_v7 = vpop.eup %2182 }
 0xcb3   :  { %v1058_v13 = vsel %vm100_vm3, %v2183_v7, 0.0 }
 0xcfa   :  { %v1020_v1 = vpop.f32.mrf.mxu1 }
 0xcfb   :  { %v2625_v2 = vadd.f32 %v2129_v30, %v1020_v1 }
 0xcfd   :  { %1432 = vrot.lane.b32.xlu0 %v2625_v2, %s2230_s13  ;;  %1353 = vrot.lane.b32.xlu2 %v2625_v2, %s2229_s1  ;;  %v1351_v3 = vmul.f32 0.35355338, %v2625_v2 }
 0xcff   :  { %1430 = vrot.lane.b32.xlu1 %v1351_v3, %s2231_s14 }
 0xd02   :  { %v1127_v8 = vpop.f32.mrf.mxu1 }
 0xd03   :  { %v1130_v16 = vsel %vm100_vm3, %v1127_v8, -inf }
 0xd05   :  { %1510 = vrot.lane.b32.xlu2 %v2625_v2, %s2236_s23 }
 0xd07   :  { %1508 = vrot.lane.b32.xlu1 %v1351_v3, %s2234_s17 }
 0xd0a   :  { %v1283_v11 = vpop.f32.mrf.mxu1 }
 0xd0b   :  { %v1286_v15 = vsel %vm100_vm3, %v1283_v11, -inf }
 0xd0d   :  { %1586 = vrot.lane.b32.xlu2 %v1351_v3, %s2235_s18 }
 0xd27   :  { %1059 = vadd.xlane.f32.xlu0 %v1058_v13 }
 0xd36   :  { %1287 = vmax.xlane.f32.xlu2 %v1286_v15 }
 0xd3b   :  { %1588 = vrot.lane.b32.xlu0 %v2625_v2, %s2233_s16 }
 0xd57   :  { %v1354_v10 = vpop.permute.xlu2 %1353 }
 0xd5f   :  { %v1511_v25 = vpop.permute.xlu2 %1510 }
 0xd65   :  { %1131 = vmax.xlane.f32.xlu0 %v1130_v16 }
 0xd67   :  { %v1587_v34 = vpop.permute.xlu2 %1586 }
 0xd6f   :  { %v1433_v18 = vpop.permute.xlu0 %1432 }
 0xd70   :  { %2082 = vmatpush.xpose.msk.msrb.mxu1 %vm100_vm3, %v1433_v18 }
 0xd71   :  { %v1431_v20 = vpop.permute.xlu1 %1430 }
 0xd73   :  { %2083 = vmatmul.msk.f32.vlgmr.msrb.gmra.mxu1 %vm100_vm3, %v1431_v20 }
 0xd79   :  { %v1509_v35 = vpop.permute.xlu1 %1508 }
 0xd9a   :  { %v1060_v9 = vpop.xlane.xlu0 %1059 }
 0xd9b   :  { %2184 = vrcp.f32 %v1060_v9  ;;  %v1072_v45 = vand.u32 2147483648, %v1060_v9  ;;  %v1070_v27 = vand.u32 2147483647, %v1060_v9  ;;  %vm1066_vm12 = vweird.f32 %v1060_v9 }
 0xd9d   :  { %v1073_v29 = vor.u32 1.1754944e-38, %v1072_v45  ;;  %vm1071_vm14 = vcmp.eq.f32.partialorder %v1070_v27, 8.507059e+37 }
 0xda1   :  { %v2185_v21 = vpop.eup %2184 }
 0xda2   :  { %v1062_v23 = vmul.f32 %v2185_v21, %v1060_v9  ;;  %vm1067_vm11 = vweird.f32 %v2185_v21 }
 0xda3   :  { %vm1068_vm13 = vmor %vm1066_vm12, %vm1067_vm11 }
 0xda4   :  { %v1063_v24 = vsub.f32 1.0, %v1062_v23 }
 0xda6   :  { %v1064_v26 = vmul.f32 %v2185_v21, %v1063_v24 }
 0xda8   :  { %v1065_v28 = vadd.f32 %v2185_v21, %v1064_v26 }
 0xda9   :  { %v1288_v44 = vpop.xlane.xlu2 %1287 }
 0xdaa   :  { %v1069_v30 = vsel %vm1068_vm13, %v2185_v21, %v1065_v28  ;;  %v1289_v48 = vsub.f32 %v1283_v11, %v1288_v44 }
 0xdab   :  { %v1074_v32 = vsel %vm1071_vm14, %v1073_v29, %v1069_v30 }
 0xdac   :  { %v1075_v33 = vmul.f32 %v2183_v7, %v1074_v32  ;;  %v1290_v50 = vmul.f32 1.442695, %v1289_v48 }
 0xdad   :  { %v1589_v5 = vpop.permute.xlu0 %1588 }
 0xdae   :  { %2069 = vmatmul.msk.f32.vlgmr.msrb.gmra.mxu0 %vm100_vm3, %v1075_v33  ;;  %2088 = vmatpush.xpose.msk.msra.mxu1 %vm100_vm3, %v1589_v5 }
 0xdaf   :  { %2079 = vmatpush.xpose.msk.msrb.mxu0 %vm100_vm3, %v1354_v10 }
 0xdb1   :  { %2089 = vmatmul.msk.f32.vlgmr.msra.gmra.mxu1 %vm100_vm3, %v1587_v34 }
 0xdb6   :  { %2074 = vmatmul.msk.f32.vlgmr.msra.gmra.mxu0 %vm100_vm3, %v1181_v17 }
 0xdb7   :  { %2085 = vmatpush.xpose.msk.msra.mxu0 %vm100_vm3, %v1511_v25 }
 0xdbe   :  { %2080 = vmatmul.msk.f32.vlgmr.msrb.gmra.mxu0 %vm100_vm3, %v1351_v3 }
 0xdc6   :  { %2086 = vmatmul.msk.f32.vlgmr.msra.gmra.mxu0 %vm100_vm3, %v1509_v35 }
 0xdd8   :  { %v1132_v38 = vpop.xlane.xlu0 %1131 }
 0xdd9   :  { %v1133_v39 = vsub.f32 %v1127_v8, %v1132_v38 }
 0xddb   :  { %v1134_v43 = vmul.f32 1.442695, %v1133_v39 }
 0xddd   :  { %2186 = vpow2.f32 %v1134_v43 }
 0xdde   :  { %2188 = vpow2.f32 %v1290_v50 }
 0xde3   :  { %v2659_v47 = vpop.eup %2186 }
 0xde4   :  { %v1136_v22 = vsel %vm100_vm3, %v2659_v47, 0.0  ;;  %v2665_v53 = vpop.eup %2188 }
 0xde5   :  { %v1292_v54 = vsel %vm100_vm3, %v2665_v53, 0.0 }
 0xdf0   :  { %v1455_v36 = vpop.f32.mrf.mxu1 }
 0xdf1   :  { %v1458_v37 = vsel %vm100_vm3, %v1455_v36, -inf }
 0xdf2   :  { %1459 = vmax.xlane.f32.xlu1 %v1458_v37 }
 0xe2b   :  { %v2653_v40 = vpop.f32.mrf.mxu0 }
 0xe2e   :  { %v1611_v31 = vpop.f32.mrf.mxu1 }
 0xe2f   :  { %v1614_v51 = vsel %vm100_vm3, %v1611_v31, -inf }
 0xe33   :  { %v2655_v46 = vpop.f32.mrf.mxu0 }
 0xe34   :  { %v1208_v41 = vsel %vm100_vm3, %v2655_v46, -inf }
 0xe35   :  { %1209 = vmax.xlane.f32.xlu1 %v1208_v41 }
 0xe3b   :  { %v1377_v0 = vpop.f32.mrf.mxu0 }
 0xe3c   :  { %v1380_v49 = vsel %vm100_vm3, %v1377_v0, -inf }
 0xe3d   :  { %1381 = vmax.xlane.f32.xlu0 %v1380_v49  ;;  %1137 = vadd.xlane.f32.xlu1 %v1136_v22 }
 0xe43   :  { %v1533_v9 = vpop.f32.mrf.mxu0 }
 0xe44   :  { %v1536_v45 = vsel %vm100_vm3, %v1533_v9, -inf }
 0xe45   :  { %1615 = vmax.xlane.f32.xlu0 %v1614_v51 }
 0xe4d   :  { %1293 = vadd.xlane.f32.xlu0 %v1292_v54 }
 0xe56   :  { %1232 = vrot.lane.b32.xlu1 %v2592_v12, %s2239_s30 }
 0xe61   :  { %1154 = vrot.lane.b32.xlu0 %v2592_v12, %s2232_s15 }
 0xe65   :  { %v1460_v55 = vpop.xlane.xlu1 %1459 }
 0xe66   :  { %v1461_v56 = vsub.f32 %v1455_v36, %v1460_v55 }
 0xe68   :  { %v1462_v42 = vmul.f32 1.442695, %v1461_v56 }
 0xe69   :  { %1404 = vrot.lane.b32.xlu0 %v2625_v2, %s2228_s12 }
 0xe6a   :  { %2190 = vpow2.f32 %v1462_v42 }
 0xe70   :  { %v2675_v57 = vpop.eup %2190 }
 0xe71   :  { %1482 = vrot.lane.b32.xlu0 %v2625_v2, %s2232_s15  ;;  %v1464_v58 = vsel %vm100_vm3, %v2675_v57, 0.0 }
 0xe72   :  { %1465 = vadd.xlane.f32.xlu2 %v1464_v58 }
 0xea8   :  { %v1210_v60 = vpop.xlane.xlu1 %1209 }
 0xea9   :  { %v1211_v32 = vsub.f32 %v2655_v46, %v1210_v60 }
 0xeab   :  { %v1212_v33 = vmul.f32 1.442695, %v1211_v32 }
 0xeb0   :  { %v1382_v61 = vpop.xlane.xlu0 %1381  ;;  %v1138_v62 = vpop.xlane.xlu1 %1137 }
 0xeb1   :  { %v1383_v63 = vsub.f32 %v1377_v0, %v1382_v61  ;;  %2192 = vrcp.f32 %v1138_v62  ;;  %v1150_v21 = vand.u32 2147483648, %v1138_v62  ;;  %vm1144_vm4 = vweird.f32 %v1138_v62 }
 0xeb2   :  { %v1148_v23 = vand.u32 2147483647, %v1138_v62 }
 0xeb3   :  { %v1384_v1 = vmul.f32 1.442695, %v1383_v63  ;;  %v1151_v26 = vor.u32 1.1754944e-38, %v1150_v21 }
 0xeb4   :  { %vm1149_vm6 = vcmp.eq.f32.partialorder %v1148_v23, 8.507059e+37 }
 0xeb5   :  { %2194 = vpow2.f32 %v1384_v1 }
 0xeb7   :  { %v2193_v6 = vpop.eup %2192 }
 0xeb8   :  { %v1616_v3 = vpop.xlane.xlu0 %1615  ;;  %v1140_v8 = vmul.f32 %v2193_v6, %v1138_v62  ;;  %vm1145_vm15 = vweird.f32 %v2193_v6 }
 0xeb9   :  { %v1617_v4 = vsub.f32 %v1611_v31, %v1616_v3  ;;  %vm1146_vm5 = vmor %vm1144_vm4, %vm1145_vm15 }
 0xeba   :  { %v1141_v15 = vsub.f32 1.0, %v1140_v8 }
 0xebb   :  { %v1618_v7 = vmul.f32 1.442695, %v1617_v4  ;;  %v2681_v13 = vpop.eup %2194 }
 0xebc   :  { %v1386_v11 = vsel %vm100_vm3, %v2681_v13, 0.0  ;;  %v1142_v18 = vmul.f32 %v2193_v6, %v1141_v15 }
 0xebd   :  { %2196 = vpow2.f32 %v1618_v7  ;;  %1387 = vadd.xlane.f32.xlu1 %v1386_v11 }
 0xebe   :  { %v1143_v10 = vadd.f32 %v2193_v6, %v1142_v18  ;;  %2198 = vpow2.f32 %v1212_v33 }
 0xec0   :  { %v1294_v24 = vpop.xlane.xlu0 %1293  ;;  %v1147_v25 = vsel %vm1146_vm5, %v2193_v6, %v1143_v10 }
 0xec1   :  { %v1152_v27 = vsel %vm1149_vm6, %v1151_v26, %v1147_v25  ;;  %2200 = vrcp.f32 %v1294_v24  ;;  %vm1300_vm11 = vweird.f32 %v1294_v24  ;;  %v1304_v48 = vand.u32 2147483647, %v1294_v24 }
 0xec2   :  { %v1153_v29 = vmul.f32 %v2659_v47, %v1152_v27  ;;  %v1306_v47 = vand.u32 2147483648, %v1294_v24 }
 0xec3   :  { %v2685_v16 = vpop.eup %2196  ;;  %vm1305_vm13 = vcmp.eq.f32.partialorder %v1304_v48, 8.507059e+37 }
 0xec4   :  { %v1620_v17 = vsel %vm100_vm3, %v2685_v16, 0.0  ;;  %v2695_v5 = vpop.eup %2198  ;;  %v1307_v31 = vor.u32 1.1754944e-38, %v1306_v47 }
 0xec5   :  { %1621 = vadd.xlane.f32.xlu2 %v1620_v17  ;;  %v1214_v34 = vsel %vm100_vm3, %v2695_v5, 0.0 }
 0xec7   :  { %v2201_v36 = vpop.eup %2200 }
 0xec8   :  { %v1233_v20 = vpop.permute.xlu1 %1232  ;;  %v1296_v37 = vmul.f32 %v2201_v36, %v1294_v24  ;;  %vm1301_vm7 = vweird.f32 %v2201_v36 }
 0xec9   :  { %1253 = vmatpush.msrb.mxu2 %v1233_v20  ;;  %vm1302_vm12 = vmor %vm1300_vm11, %vm1301_vm7 }
 0xeca   :  { %v1297_v38 = vsub.f32 1.0, %v1296_v37 }
 0xecc   :  { %v1298_v43 = vmul.f32 %v2201_v36, %v1297_v38 }
 0xecd   :  { %1537 = vmax.xlane.f32.xlu2 %v1536_v45 }
 0xece   :  { %v1299_v41 = vadd.f32 %v2201_v36, %v1298_v43 }
 0xed0   :  { %v1303_v22 = vsel %vm1302_vm12, %v2201_v36, %v1299_v41 }
 0xed1   :  { %v1308_v54 = vsel %vm1305_vm13, %v1307_v31, %v1303_v22 }
 0xed2   :  { %v1309_v60 = vmul.f32 %v2665_v53, %v1308_v54 }
 0xed3   :  { %v1155_v28 = vpop.permute.xlu0 %1154 }
 0xed4   :  { %1175 = vmatpush.msrb.mxu3 %v1155_v28 }
 0xed5   :  { %2072 = vmatmul.msk.f32.vlgmr.msrb.gmra.mxu3 %vm100_vm3, %v1153_v29 }
 0xedb   :  { %v1405_v30 = vpop.permute.xlu0 %1404 }
 0xedc   :  { %1425 = vmatpush.msra.mxu2 %v1405_v30 }
 0xee3   :  { %v1483_v61 = vpop.permute.xlu0 %1482 }
 0xee5   :  { %1310 = vrot.lane.b32.xlu2 %v2592_v12, %s2237_s26  ;;  %v1466_v35 = vpop.xlane.xlu2 %1465 }
 0xee6   :  { %2202 = vrcp.f32 %v1466_v35  ;;  %v1478_v56 = vand.u32 2147483648, %v1466_v35  ;;  %vm1472_vm15 = vweird.f32 %v1466_v35  ;;  %v1476_v42 = vand.u32 2147483647, %v1466_v35 }
 0xee8   :  { %v1479_v1 = vor.u32 1.1754944e-38, %v1478_v56  ;;  %vm1477_vm5 = vcmp.eq.f32.partialorder %v1476_v42, 8.507059e+37 }
 0xeec   :  { %v2203_v12 = vpop.eup %2202 }
 0xeed   :  { %v1468_v46 = vmul.f32 %v2203_v12, %v1466_v35  ;;  %vm1473_vm14 = vweird.f32 %v2203_v12 }
 0xeee   :  { %vm1474_vm4 = vmor %vm1472_vm15, %vm1473_vm14 }
 0xeef   :  { %v1469_v44 = vsub.f32 1.0, %v1468_v46 }
 0xef1   :  { %v1470_v50 = vmul.f32 %v2203_v12, %v1469_v44 }
 0xef3   :  { %v1471_v55 = vadd.f32 %v2203_v12, %v1470_v50 }
 0xef5   :  { %v1475_v62 = vsel %vm1474_vm4, %v2203_v12, %v1471_v55 }
 0xef6   :  { %v1480_v4 = vsel %vm1477_vm5, %v1479_v1, %v1475_v62  ;;  %v1681_v1 = vld [vmem:[%s2879_s3 + $0xe0] sm:$0xff] }
 0xef7   :  { %v1481_v6 = vmul.f32 %v2675_v57, %v1480_v4  ;;  %v1679_v4 = vld [vmem:[%s2879_s3 + $0xd0] sm:$0xff] }
 0xf0e   :  { %1215 = vadd.xlane.f32.xlu2 %v1214_v34 }
 0xf26   :  { %1560 = vrot.lane.b32.xlu2 %v2625_v2, %s2239_s30 }
 0xf30   :  { %v1388_v7 = vpop.xlane.xlu1 %1387 }
 0xf31   :  { %v1400_v26 = vand.u32 2147483648, %v1388_v7  ;;  %vm1394_vm14 = vweird.f32 %v1388_v7  ;;  %v1398_v28 = vand.u32 2147483647, %v1388_v7 }
 0xf33   :  { %v1401_v33 = vor.u32 1.1754944e-38, %v1400_v26  ;;  %vm1399_vm4 = vcmp.eq.f32.partialorder %v1398_v28, 8.507059e+37 }
 0xf38   :  { %v2701_v39 = vpop.xlane.xlu2 %1621 }
 0xf39   :  { %v1634_v22 = vand.u32 2147483648, %v2701_v39  ;;  %v1632_v31 = vand.u32 2147483647, %v2701_v39 }
 0xf3b   :  { %v1635_v42 = vor.u32 1.1754944e-38, %v1634_v22 }
 0xf40   :  { %v1538_v0 = vpop.xlane.xlu2 %1537 }
 0xf41   :  { %v1539_v49 = vsub.f32 %v1533_v9, %v1538_v0 }
 0xf43   :  { %v1540_v51 = vmul.f32 1.442695, %v1539_v49 }
 0xf45   :  { %2204 = vpow2.f32 %v1540_v51 }
 0xf46   :  { %2206 = vrcp.f32 %v1388_v7 }
 0xf48   :  { %v1311_v58 = vpop.permute.xlu2 %1310 }
 0xf49   :  { %1331 = vmatpush.msra.mxu3 %v1311_v58 }
 0xf4a   :  { %2078 = vmatmul.msk.f32.vlgmr.msra.gmra.mxu3 %vm100_vm3, %v1309_v60 }
 0xf4b   :  { %v2705_v63 = vpop.eup %2204  ;;  %1503 = vmatpush.msrb.mxu3 %v1483_v61 }
 0xf4c   :  { %v1542_v3 = vsel %vm100_vm3, %v2705_v63, 0.0  ;;  %v2207_v11 = vpop.eup %2206 }
 0xf4d   :  { %1543 = vadd.xlane.f32.xlu1 %v1542_v3  ;;  %v1390_v15 = vmul.f32 %v2207_v11, %v1388_v7  ;;  %vm1395_vm12 = vweird.f32 %v2207_v11  ;;  %v1680_v3 = vld [vmem:[%s2879_s3 + $0xd8] sm:$0xff] }
 0xf4e   :  { %vm1396_vm15 = vmor %vm1394_vm14, %vm1395_vm12  ;;  %vm1628_vm12 = vweird.f32 %v2701_v39 }
 0xf4f   :  { %v1391_v18 = vsub.f32 1.0, %v1390_v15 }
 0xf51   :  { %v1392_v57 = vmul.f32 %v2207_v11, %v1391_v18 }
 0xf52   :  { %2084 = vmatmul.msk.f32.vlgmr.msrb.gmra.mxu3 %vm100_vm3, %v1481_v6 }
 0xf58   :  { %v1177_v53 = vpop.f32.mrf.mxu3 }
 0xf59   :  { %1337 = vrot.lane.b32.xlu0 %v1177_v53, %s2238_s27 }
 0xf66   :  { %1638 = vrot.lane.b32.xlu1 %v2625_v2, %s2237_s26  ;;  %v1393_v2 = vadd.f32 %v2207_v11, %v1392_v57  ;;  %s2243_s26 = smov 6  }
 0xf68   :  { %v1397_v30 = vsel %vm1396_vm15, %v2207_v11, %v1393_v2  ;;  %vm1633_vm15 = vcmp.eq.f32.partialorder %v1632_v31, 8.507059e+37  ;;  %v2130_v2 = vld [vmem:[%s2881_s4 + $0x9] ss:$0 sm:$0xff] }
 0xf69   :  { %v1402_v34 = vsel %vm1399_vm4, %v1401_v33, %v1397_v30 }
 0xf6a   :  { %v1403_v35 = vmul.f32 %v2681_v13, %v1402_v34 }
 0xf81   :  { %v1216_v8 = vpop.xlane.xlu2 %1215 }
 0xf82   :  { %2208 = vrcp.f32 %v1216_v8  ;;  %v1228_v10 = vand.u32 2147483648, %v1216_v8  ;;  %v1226_v23 = vand.u32 2147483647, %v1216_v8  ;;  %vm1222_vm7 = vweird.f32 %v1216_v8 }
 0xf83   :  { %2210 = vrcp.f32 %v2701_v39 }
 0xf84   :  { %v1229_v45 = vor.u32 1.1754944e-38, %v1228_v10  ;;  %vm1227_vm13 = vcmp.eq.f32.partialorder %v1226_v23, 8.507059e+37 }
 0xf88   :  { %v2209_v17 = vpop.eup %2208 }
 0xf89   :  { %v1218_v20 = vmul.f32 %v2209_v17, %v1216_v8  ;;  %vm1223_vm6 = vweird.f32 %v2209_v17  ;;  %v1561_v32 = vpop.permute.xlu2 %1560  ;;  %v2211_v36 = vpop.eup %2210 }
 0xf8a   :  { %vm1224_vm11 = vmor %vm1222_vm7, %vm1223_vm6  ;;  %vm1629_vm6 = vweird.f32 %v2211_v36 }
 0xf8b   :  { %v1219_v9 = vsub.f32 1.0, %v1218_v20  ;;  %vm1630_vm14 = vmor %vm1628_vm12, %vm1629_vm6  ;;  %v1986_v20 = vld [vmem:[%s2879_s3 + $0x178] sm:$0x3] }
 0xf8d   :  { %v1220_v21 = vmul.f32 %v2209_v17, %v1219_v9  ;;  %v1985_v9 = vld [vmem:[%s2879_s3 + $0x170] sm:$0xff] }
 0xf8f   :  { %v1221_v24 = vadd.f32 %v2209_v17, %v1220_v21 }
 0xf91   :  { %v1225_v25 = vsel %vm1224_vm11, %v2209_v17, %v1221_v24 }
 0xf92   :  { %v1230_v27 = vsel %vm1227_vm13, %v1229_v45, %v1225_v25  ;;  %v2226_v45 = vld [vmem:[%s2880_s0] sm:$0xff] }
 0xf93   :  { %v1231_v29 = vmul.f32 %v2695_v5, %v1230_v27  ;;  %v1624_v5 = vmul.f32 %v2211_v36, %v2701_v39 }
 0xf95   :  { %2075 = vmatmul.msk.f32.vlgmr.msrb.gmra.mxu2 %vm100_vm3, %v1231_v29  ;;  %v1625_v38 = vsub.f32 1.0, %v1624_v5 }
 0xf96   :  { %1581 = vmatpush.msrb.mxu2 %v1561_v32 }
 0xf97   :  { %v1626_v46 = vmul.f32 %v2211_v36, %v1625_v38 }
 0xf99   :  { %v1627_v13 = vadd.f32 %v2211_v36, %v1626_v46  ;;  %v1770_v46 = vld [vmem:[%s2879_s3 + $0x100] sm:$0xff] }
 0xf9b   :  { %v1631_v55 = vsel %vm1630_vm14, %v2211_v36, %v1627_v13 }
 0xf9c   :  { %v1636_v58 = vsel %vm1633_vm15, %v1635_v42, %v1631_v55  ;;  %v2132_v42 = vld [vmem:[%s2881_s4 + $0xb] ss:$0 sm:$0xff] }
 0xf9d   :  { %2081 = vmatmul.msk.f32.vlgmr.msra.gmra.mxu2 %vm100_vm3, %v1403_v35  ;;  %v1637_v62 = vmul.f32 %v2685_v16, %v1636_v58 }
 0xfc0   :  { %v1544_v37 = vpop.xlane.xlu1 %1543 }
 0xfc1   :  { %2212 = vrcp.f32 %v1544_v37  ;;  %v1556_v44 = vand.u32 2147483648, %v1544_v37  ;;  %v1554_v48 = vand.u32 2147483647, %v1544_v37  ;;  %vm1550_vm7 = vweird.f32 %v1544_v37 }
 0xfc3   :  { %v1557_v50 = vor.u32 1.1754944e-38, %v1556_v44  ;;  %vm1555_vm13 = vcmp.eq.f32.partialorder %v1554_v48, 8.507059e+37  ;;  %v1768_v44 = vld [vmem:[%s2879_s3 + $0xf0] sm:$0xff] }
 0xfc7   :  { %v2213_v12 = vpop.eup %2212 }
 0xfc8   :  { %v1546_v43 = vmul.f32 %v2213_v12, %v1544_v37  ;;  %vm1551_vm5 = vweird.f32 %v2213_v12 }
 0xfc9   :  { %vm1552_vm11 = vmor %vm1550_vm7, %vm1551_vm5 }
 0xfca   :  { %v1547_v41 = vsub.f32 1.0, %v1546_v43 }
 0xfcb   :  { %v1338_v7 = vpop.permute.xlu0 %1337 }
 0xfcc   :  { %v1548_v47 = vmul.f32 %v2213_v12, %v1547_v41  ;;  %v1348_v8 = vsel %vm100_vm3, %v2653_v40, %v1338_v7  ;;  %v1769_v41 = vld [vmem:[%s2879_s3 + $0xf8] sm:$0xff] }
 0xfcd   :  { %v1333_v0 = vpop.f32.mrf.mxu3 }
 0xfce   :  { %v1549_v49 = vadd.f32 %v2213_v12, %v1548_v47  ;;  %1345 = vrot.lane.b32.xlu1 %v1333_v0, %s2241_s6 }
 0xfd0   :  { %v1553_v51 = vsel %vm1552_vm11, %v2213_v12, %v1549_v49 }
 0xfd1   :  { %v1558_v54 = vsel %vm1555_vm13, %v1557_v50, %v1553_v51 }
 0xfd2   :  { %v1559_v56 = vmul.f32 %v2705_v63, %v1558_v54  ;;  %v1682_v63 = vld [vmem:[%s2879_s3 + $0xe8] sm:$0xff] }
 0xfd3   :  { %1703 = vmatpush.msrb.mxu0 %v1682_v63  ;;  %v2131_v54 = vld [vmem:[%s2881_s4 + $0xa] ss:$0 sm:$0xff] }
 0xfd4   :  { %2087 = vmatmul.msk.f32.vlgmr.msrb.gmra.mxu2 %vm100_vm3, %v1559_v56 }
 0xfd5   :  { %v1505_v60 = vpop.f32.mrf.mxu3  ;;  %1704 = vmatpush.msrb.mxu0 %v1681_v1 }
 0xfd6   :  { %1665 = vrot.lane.b32.xlu0 %v1505_v60, %s2238_s27 }
 0xfd7   :  { %1705 = vmatpush.msrb.mxu0 %v1680_v3  ;;  %v1809_v3 = vld [vmem:[%s2879_s3 + $0x130] sm:$0xff] }
 0xfd8   :  { %v1639_v61 = vpop.permute.xlu1 %1638 }
 0xfd9   :  { %1659 = vmatpush.msra.mxu3 %v1639_v61  ;;  %1706 = vmatpush.msrb.mxu0 %v1679_v4  ;;  %v1812_v61 = vld [vmem:[%s2879_s3 + $0x148] sm:$0xff] }
 0xfda   :  { %2090 = vmatmul.msk.f32.vlgmr.msra.gmra.mxu3 %vm100_vm3, %v1637_v62  ;;  %v1811_v62 = vld [vmem:[%s2879_s3 + $0x140] sm:$0xff]  ;;  %1829 = vmatpush.msrb.mxu1 %v1812_v61  ;;  %v1808_v4 = vld [vmem:[%s2879_s3 + $0x128] sm:$0xff] }
 0xfdb   :  { %2099 = vmatpush.msk.msra.mxu0 %vm32_vm0, %v1986_v20 }
 0xfdc   :  { %1830 = vmatpush.msrb.mxu1 %v1811_v62 }
 0xfdd   :  { %2005 = vmatpush.msra.mxu0 %v1985_v9 }
0x1018   :  { %v1255_v39 = vpop.f32.mrf.mxu2 }
0x1019   :  { %1341 = vrot.lane.b32.xlu2 %v1255_v39, %s2240_s2  ;;  %v1810_v39 = vld [vmem:[%s2879_s3 + $0x138] sm:$0xff] }
0x101a   :  { %1831 = vmatpush.msrb.mxu1 %v1810_v39 }
0x101c   :  { %1832 = vmatpush.msrb.mxu1 %v1809_v3 }
0x101e   :  { %1833 = vmatpush.msrb.mxu1 %v1808_v4 }
0x1020   :  { %v1427_v16 = vpop.f32.mrf.mxu2 }
0x1040   :  { %v1346_v15 = vpop.permute.xlu1 %1345 }
0x1048   :  { %v1666_v40 = vpop.permute.xlu0 %1665 }
0x1049   :  { %v1676_v57 = vsel %vm100_vm3, %v1427_v16, %v1666_v40  ;;  %v1807_v40 = vld [vmem:[%s2879_s3 + $0x120] sm:$0xff] }
0x104a   :  { %1834 = vmatpush.msrb.mxu1 %v1807_v40 }
0x1057   :  { %v1583_v6 = vpop.f32.mrf.mxu2 }
0x1058   :  { %1669 = vrot.lane.b32.xlu2 %v1583_v6, %s2240_s2 }
0x105d   :  { %v1661_v53 = vpop.f32.mrf.mxu3 }
0x105e   :  { %1673 = vrot.lane.b32.xlu1 %v1661_v53, %s2241_s6 }
0x1073   :  { %v1342_v11 = vpop.permute.xlu2 %1341 }
0x1074   :  { %v1349_v17 = vsel %vm429_vm8, %v1348_v8, %v1342_v11 }
0x1075   :  { %v1350_v18 = vsel %vm431_vm9, %v1349_v17, %v1346_v15 }
0x1076   :  { %2091 = vmatmul.msk.f32.vlgmr.msrb.gmra.mxu0 %vm65_vm2, %v1350_v18 }
0x10b2   :  { %v1670_v10 = vpop.permute.xlu2 %1669 }
0x10b3   :  { %v1677_v21 = vsel %vm429_vm8, %v1676_v57, %v1670_v10  ;;  %v1806_v10 = vld [vmem:[%s2879_s3 + $0x118] sm:$0xff]  ;;  %v1805_v57 = vld [vmem:[%s2879_s3 + $0x110] sm:$0xff] }
0x10b4   :  { %1835 = vmatpush.msrb.mxu1 %v1806_v10 }
0x10b6   :  { %1836 = vmatpush.msrb.mxu1 %v1805_v57 }
0x10d0   :  { %v1674_v23 = vpop.permute.xlu1 %1673 }
0x10d1   :  { %v1678_v24 = vsel %vm431_vm9, %v1677_v21, %v1674_v23  ;;  %v2133_v21 = vld [vmem:[%s2881_s4 + $0xc] ss:$0 sm:$0xff] }
0x10d2   :  { %2092 = vmatmul.msk.f32.gmra.mxu0 %vm65_vm2, %v1678_v24 }
0x10da   :  { %2100 = vmatmul.msk.f32.vlgmr.msra.gmra.mxu0 %vm27_vm1, %v2226_v45 }
0x10e2   :  { %2101 = vmatmul.msk.f32.gmra.mxu0 %vm27_vm1, %v2327_v14 }
0x10f3   :  { %v1708_v25 = vpop.f32.mrf.mxu0 }
0x10f4   :  { %v1709_v26 = vadd.f32 %v2130_v2, %v1708_v25 }
0x10f6   :  { %v1714_v27 = vadd.f32 %v1709_v26, %v2583_v19 }
0x10f8   :  { %v1716_v28 = vsel %vm65_vm2, %v1714_v27, 0.0 }
0x10f9   :  { %1717 = vadd.xlane.f32.xlu0 %v1716_v28 }
0x114f   :  { %v1711_v29 = vpop.f32.mrf.mxu0 }
0x1150   :  { %v1712_v30 = vadd.f32 %v2130_v2, %v1711_v29 }
0x1152   :  { %v1715_v32 = vadd.f32 %v1712_v30, %v2618_v59  ;;  %v1771_v59 = vld [vmem:[%s2879_s3 + $0x108] sm:$0xff] }
0x1153   :  { %1792 = vmatpush.msra.mxu2 %v1771_v59 }
0x1154   :  { %v1719_v33 = vsel %vm65_vm2, %v1715_v32, 0.0 }
0x1155   :  { %1720 = vadd.xlane.f32.xlu2 %v1719_v33  ;;  %1793 = vmatpush.msra.mxu2 %v1770_v46 }
0x1157   :  { %1794 = vmatpush.msra.mxu2 %v1769_v41 }
0x1159   :  { %1795 = vmatpush.msra.mxu2 %v1768_v44 }
0x116c   :  { %v1718_v34 = vpop.xlane.xlu0 %1717 }
0x116d   :  { %v1722_v14 = vmul.f32 %v1718_v34, %v2477_v52 }
0x116f   :  { %v1724_v35 = vsub.f32 %v1714_v27, %v1722_v14  ;;  %v2134_v27 = vld [vmem:[%s2881_s4 + $0xd] ss:$0 sm:$0xff] }
0x1171   :  { %v1726_v36 = vmul.f32 %v1724_v35, %v1724_v35 }
0x1173   :  { %v1728_v37 = vsel %vm65_vm2, %v1726_v36, 0.0 }
0x1174   :  { %1729 = vadd.xlane.f32.xlu1 %v1728_v37 }
0x11c8   :  { %v1721_v5 = vpop.xlane.xlu2 %1720 }
0x11c9   :  { %v1723_v19 = vmul.f32 %v1721_v5, %v2477_v52 }
0x11cb   :  { %v1725_v38 = vsub.f32 %v1715_v32, %v1723_v19 }
0x11cd   :  { %v1727_v12 = vmul.f32 %v1725_v38, %v1725_v38 }
0x11cf   :  { %v1731_v43 = vsel %vm65_vm2, %v1727_v12, 0.0 }
0x11d0   :  { %1732 = vadd.xlane.f32.xlu0 %v1731_v43 }
0x11e7   :  { %v1730_v47 = vpop.xlane.xlu1 %1729 }
0x11e8   :  { %v1734_v48 = vmul.f32 %v1730_v47, %v2477_v52 }
0x11ea   :  { %v1736_v0 = vadd.f32 1e-05, %v1734_v48 }
0x11ec   :  { %2214 = vrsqrt.f32 %v1736_v0  ;;  %vm1744_vm1 = vweird.f32 %v1736_v0 }
0x11f2   :  { %v2215_v13 = vpop.eup %2214 }
0x11f3   :  { %v1739_v49 = vmul.f32 %v2215_v13, %v1736_v0  ;;  %vm1745_vm0 = vweird.f32 %v2215_v13 }
0x11f4   :  { %vm1746_vm3 = vmor %vm1744_vm1, %vm1745_vm0 }
0x11f5   :  { %v1740_v22 = vmul.f32 %v2215_v13, %v1739_v49 }
0x11f7   :  { %v1741_v50 = vmul.f32 0.5, %v1740_v22 }
0x11f9   :  { %v1742_v31 = vsub.f32 1.5, %v1741_v50 }
0x11fb   :  { %v1743_v51 = vmul.f32 %v2215_v13, %v1742_v31 }
0x11fd   :  { %v1747_v55 = vsel %vm1746_vm3, %v2215_v13, %v1743_v51  ;;  %v2135_v51 = vld [vmem:[%s2881_s4 + $0xe] ss:$0 sm:$0xff] }
0x11fe   :  { %v1758_v56 = vmul.f32 %v1747_v55, %v1724_v35 }
0x1200   :  { %v1762_v58 = vmul.f32 %v2131_v54, %v1758_v56  ;;  %v2136_v56 = vld [vmem:[%s2881_s4 + $0xf] ss:$0 sm:$0xff] }
0x1202   :  { %v1766_v60 = vadd.f32 %v2132_v42, %v1762_v58 }
0x1204   :  { %2093 = vmatmul.msk.f32.vlgmr.msra.gmra.mxu2 %vm65_vm2, %v1766_v60 }
0x1243   :  { %v1733_v63 = vpop.xlane.xlu0 %1732 }
0x1244   :  { %v1735_v1 = vmul.f32 %v1733_v63, %v2477_v52 }
0x1246   :  { %v1737_v16 = vadd.f32 1e-05, %v1735_v1 }
0x1248   :  { %2216 = vrsqrt.f32 %v1737_v16  ;;  %vm1754_vm9 = vweird.f32 %v1737_v16 }
0x124e   :  { %v2217_v6 = vpop.eup %2216 }
0x124f   :  { %v1749_v53 = vmul.f32 %v2217_v6, %v1737_v16  ;;  %vm1755_vm8 = vweird.f32 %v2217_v6 }
0x1250   :  { %vm1756_vm4 = vmor %vm1754_vm9, %vm1755_vm8  ;;  %vm2019_vm8 = vcmask 48128   ;;  %vm2021_vm9 = vcmask 97280  }
0x1251   :  { %v1750_v7 = vmul.f32 %v2217_v6, %v1749_v53 }
0x1253   :  { %v1751_v8 = vmul.f32 0.5, %v1750_v7 }
0x1255   :  { %v1752_v11 = vsub.f32 1.5, %v1751_v8 }
0x1257   :  { %v1753_v15 = vmul.f32 %v2217_v6, %v1752_v11 }
0x1259   :  { %v1757_v17 = vsel %vm1756_vm4, %v2217_v6, %v1753_v15 }
0x125a   :  { %v1759_v18 = vmul.f32 %v1757_v17, %v1725_v38 }
0x125c   :  { %v1763_v20 = vmul.f32 %v2131_v54, %v1759_v18 }
0x125e   :  { %v1767_v9 = vadd.f32 %v2132_v42, %v1763_v20 }
0x1260   :  { %2094 = vmatmul.msk.f32.gmra.mxu2 %vm65_vm2, %v1767_v9 }
0x1287   :  { %v1797_v23 = vpop.f32.mrf.mxu2 }
0x1288   :  { %v1798_v24 = vadd.f32 %v2133_v21, %v1797_v23 }
0x128a   :  { %v1803_v45 = vmax.f32 %v1798_v24, 0.0 }
0x128c   :  { %2095 = vmatmul.msk.f32.vlgmr.msrb.gmra.mxu1 %vm904_vm10, %v1803_v45  ;;  %v1953_v45 = vld [vmem:[%s2879_s3 + $0x168] sm:$0xff] }
0x128d   :  { %1974 = vmatpush.msrb.mxu3 %v1953_v45 }
0x12e3   :  { %v1800_v2 = vpop.f32.mrf.mxu2 }
0x12e4   :  { %v1801_v25 = vadd.f32 %v2133_v21, %v1800_v2  ;;  %v1952_v2 = vld [vmem:[%s2879_s3 + $0x160] sm:$0xff] }
0x12e5   :  { %1975 = vmatpush.msrb.mxu3 %v1952_v2 }
0x12e6   :  { %v1804_v26 = vmax.f32 %v1801_v25, 0.0  ;;  %v1951_v25 = vld [vmem:[%s2879_s3 + $0x158] sm:$0xff] }
0x12e7   :  { %1976 = vmatpush.msrb.mxu3 %v1951_v25 }
0x12e8   :  { %2096 = vmatmul.msk.f32.gmra.mxu1 %vm904_vm10, %v1804_v26  ;;  %v1950_v26 = vld [vmem:[%s2879_s3 + $0x150] sm:$0xff] }
0x12e9   :  { %1977 = vmatpush.msrb.mxu3 %v1950_v26 }
0x1309   :  { %v1838_v28 = vpop.f32.mrf.mxu1 }
0x130a   :  { %v1839_v29 = vadd.f32 %v2134_v27, %v1838_v28 }
0x130c   :  { %v1844_v30 = vadd.f32 %v1839_v29, %v1766_v60 }
0x130e   :  { %v1846_v32 = vsel %vm65_vm2, %v1844_v30, 0.0 }
0x130f   :  { %1847 = vadd.xlane.f32.xlu2 %v1846_v32 }
0x1365   :  { %v1841_v33 = vpop.f32.mrf.mxu1 }
0x1366   :  { %v1842_v34 = vadd.f32 %v2134_v27, %v1841_v33 }
0x1368   :  { %v1845_v14 = vadd.f32 %v1842_v34, %v1767_v9 }
0x136a   :  { %v1849_v35 = vsel %vm65_vm2, %v1845_v14, 0.0 }
0x136b   :  { %1850 = vadd.xlane.f32.xlu1 %v1849_v35 }
0x1382   :  { %v1848_v36 = vpop.xlane.xlu2 %1847 }
0x1383   :  { %v1852_v37 = vmul.f32 %v1848_v36, %v2477_v52  ;;  %v2137_v36 = vld [vmem:[%s2881_s4 + $0x10] ss:$0 sm:$0xff] }
0x1385   :  { %v1854_v5 = vsub.f32 %v1844_v30, %v1852_v37 }
0x1387   :  { %v1856_v19 = vmul.f32 %v1854_v5, %v1854_v5 }
0x1389   :  { %v1858_v38 = vsel %vm65_vm2, %v1856_v19, 0.0  ;;  %v2138_v19 = vld [vmem:[%s2881_s4 + $0x11] ss:$0 sm:$0xff] }
0x138a   :  { %1859 = vadd.xlane.f32.xlu0 %v1858_v38 }
0x13de   :  { %v1851_v12 = vpop.xlane.xlu1 %1850 }
0x13df   :  { %v1853_v43 = vmul.f32 %v1851_v12, %v2477_v52 }
0x13e1   :  { %v1855_v59 = vsub.f32 %v1845_v14, %v1853_v43 }
0x13e3   :  { %v1857_v46 = vmul.f32 %v1855_v59, %v1855_v59 }
0x13e5   :  { %v1861_v41 = vsel %vm65_vm2, %v1857_v46, 0.0 }
0x13e6   :  { %1862 = vadd.xlane.f32.xlu2 %v1861_v41 }
0x13fd   :  { %v1860_v44 = vpop.xlane.xlu0 %1859 }
0x13fe   :  { %v1864_v47 = vmul.f32 %v1860_v44, %v2477_v52 }
0x1400   :  { %v1866_v48 = vadd.f32 1e-05, %v1864_v47 }
0x1402   :  { %2218 = vrsqrt.f32 %v1866_v48  ;;  %vm1874_vm5 = vweird.f32 %v1866_v48 }
0x1408   :  { %v2219_v0 = vpop.eup %2218 }
0x1409   :  { %v1869_v13 = vmul.f32 %v2219_v0, %v1866_v48  ;;  %vm1875_vm10 = vweird.f32 %v2219_v0 }
0x140a   :  { %vm1876_vm6 = vmor %vm1874_vm5, %vm1875_vm10 }
0x140b   :  { %v1870_v49 = vmul.f32 %v2219_v0, %v1869_v13 }
0x140d   :  { %v1871_v22 = vmul.f32 0.5, %v1870_v49 }
0x140f   :  { %v1872_v50 = vsub.f32 1.5, %v1871_v22 }
0x1411   :  { %v1873_v31 = vmul.f32 %v2219_v0, %v1872_v50 }
0x1413   :  { %v1877_v54 = vsel %vm1876_vm6, %v2219_v0, %v1873_v31 }
0x1414   :  { %v1888_v55 = vmul.f32 %v1877_v54, %v1854_v5 }
0x1416   :  { %v1892_v42 = vmul.f32 %v2135_v51, %v1888_v55 }
0x1418   :  { %v1896_v58 = vadd.f32 %v2136_v56, %v1892_v42 }
0x141a   :  { %v1898_v60 = vsel %vm65_vm2, %v1896_v58, 0.0 }
0x141b   :  { %1899 = vadd.xlane.f32.xlu1 %v1898_v60 }
0x1459   :  { %v1863_v61 = vpop.xlane.xlu2 %1862 }
0x145a   :  { %v1865_v62 = vmul.f32 %v1863_v61, %v2477_v52 }
0x145c   :  { %v1867_v39 = vadd.f32 1e-05, %v1865_v62 }
0x145e   :  { %2220 = vrsqrt.f32 %v1867_v39  ;;  %vm1884_vm11 = vweird.f32 %v1867_v39 }
0x1464   :  { %v2221_v63 = vpop.eup %2220 }
0x1465   :  { %v1879_v1 = vmul.f32 %v2221_v63, %v1867_v39  ;;  %vm1885_vm7 = vweird.f32 %v2221_v63 }
0x1466   :  { %vm1886_vm12 = vmor %vm1884_vm11, %vm1885_vm7 }
0x1467   :  { %v1880_v3 = vmul.f32 %v2221_v63, %v1879_v1 }
0x1469   :  { %v1881_v16 = vmul.f32 0.5, %v1880_v3 }
0x146b   :  { %v1882_v4 = vsub.f32 1.5, %v1881_v16 }
0x146d   :  { %v1883_v6 = vmul.f32 %v2221_v63, %v1882_v4 }
0x146f   :  { %v1887_v53 = vsel %vm1886_vm12, %v2221_v63, %v1883_v6 }
0x1470   :  { %v1889_v7 = vmul.f32 %v1887_v53, %v1855_v59 }
0x1472   :  { %v1893_v8 = vmul.f32 %v2135_v51, %v1889_v7  ;;  %v2007_v51 = vpop.f32.mrf.mxu0 }
0x1474   :  { %v1897_v11 = vadd.f32 %v2136_v56, %v1893_v8 }
0x1476   :  { %v1901_v15 = vsel %vm65_vm2, %v1897_v11, 0.0 }
0x1477   :  { %1902 = vadd.xlane.f32.xlu0 %v1901_v15 }
0x147a   :  { %v2010_v42 = vpop.f32.mrf.mxu0 }
0x148e   :  { %v1900_v17 = vpop.xlane.xlu1 %1899 }
0x148f   :  { %v1904_v18 = vmul.f32 %v1900_v17, %v2477_v52 }
0x1491   :  { %v1906_v20 = vsub.f32 %v1896_v58, %v1904_v18 }
0x1493   :  { %v1908_v9 = vmul.f32 %v1906_v20, %v1906_v20 }
0x1495   :  { %v1910_v40 = vsel %vm65_vm2, %v1908_v9, 0.0 }
0x1496   :  { %1911 = vadd.xlane.f32.xlu2 %v1910_v40 }
0x14ea   :  { %v1903_v10 = vpop.xlane.xlu0 %1902 }
0x14eb   :  { %v1905_v57 = vmul.f32 %v1903_v10, %v2477_v52 }
0x14ed   :  { %v1907_v21 = vsub.f32 %v1897_v11, %v1905_v57 }
0x14ef   :  { %v1909_v23 = vmul.f32 %v1907_v21, %v1907_v21 }
0x14f1   :  { %v1913_v24 = vsel %vm65_vm2, %v1909_v23, 0.0 }
0x14f2   :  { %1914 = vadd.xlane.f32.xlu1 %v1913_v24 }
0x1509   :  { %v1912_v27 = vpop.xlane.xlu2 %1911 }
0x150a   :  { %v1916_v28 = vmul.f32 %v1912_v27, %v2477_v52 }
0x150c   :  { %v1918_v29 = vadd.f32 1e-05, %v1916_v28 }
0x150e   :  { %2222 = vrsqrt.f32 %v1918_v29  ;;  %vm1926_vm14 = vweird.f32 %v1918_v29 }
0x1514   :  { %v2223_v30 = vpop.eup %2222 }
0x1515   :  { %v1921_v32 = vmul.f32 %v2223_v30, %v1918_v29  ;;  %vm1927_vm13 = vweird.f32 %v2223_v30 }
0x1516   :  { %vm1928_vm15 = vmor %vm1926_vm14, %vm1927_vm13 }
0x1517   :  { %v1922_v33 = vmul.f32 %v2223_v30, %v1921_v32 }
0x1519   :  { %v1923_v34 = vmul.f32 0.5, %v1922_v33 }
0x151b   :  { %v1924_v14 = vsub.f32 1.5, %v1923_v34 }
0x151d   :  { %v1925_v35 = vmul.f32 %v2223_v30, %v1924_v14 }
0x151f   :  { %v1929_v37 = vsel %vm1928_vm15, %v2223_v30, %v1925_v35 }
0x1520   :  { %v1940_v5 = vmul.f32 %v1929_v37, %v1906_v20 }
0x1522   :  { %v1944_v38 = vmul.f32 %v2137_v36, %v1940_v5 }
0x1524   :  { %v1948_v12 = vadd.f32 %v2138_v19, %v1944_v38 }
0x1526   :  { %2097 = vmatmul.msk.f32.vlgmr.msrb.gmra.mxu3 %vm65_vm2, %v1948_v12 }
0x1565   :  { %v1915_v43 = vpop.xlane.xlu1 %1914 }
0x1566   :  { %v1917_v59 = vmul.f32 %v1915_v43, %v2477_v52  ;;  %v2139_v52 = vld [vmem:[%s2881_s4 + $0x12] ss:$0 sm:$0xff] }
0x1568   :  { %v1919_v46 = vadd.f32 1e-05, %v1917_v59 }
0x156a   :  { %2224 = vrsqrt.f32 %v1919_v46  ;;  %vm1936_vm1 = vweird.f32 %v1919_v46 }
0x1570   :  { %v2225_v41 = vpop.eup %2224 }
0x1571   :  { %v1931_v44 = vmul.f32 %v2225_v41, %v1919_v46  ;;  %vm1937_vm0 = vweird.f32 %v2225_v41 }
0x1572   :  { %vm1938_vm3 = vmor %vm1936_vm1, %vm1937_vm0 }
0x1573   :  { %v1932_v47 = vmul.f32 %v2225_v41, %v1931_v44 }
0x1575   :  { %v1933_v48 = vmul.f32 0.5, %v1932_v47 }
0x1577   :  { %v1934_v0 = vsub.f32 1.5, %v1933_v48 }
0x1579   :  { %v1935_v13 = vmul.f32 %v2225_v41, %v1934_v0 }
0x157b   :  { %v1939_v49 = vsel %vm1938_vm3, %v2225_v41, %v1935_v13 }
0x157c   :  { %v1941_v22 = vmul.f32 %v1939_v49, %v1907_v21 }
0x157e   :  { %v1945_v50 = vmul.f32 %v2137_v36, %v1941_v22 }
0x1580   :  { %v1949_v31 = vadd.f32 %v2138_v19, %v1945_v50 }
0x1582   :  { %2098 = vmatmul.msk.f32.gmra.mxu3 %vm65_vm2, %v1949_v31 }
0x15a9   :  { %v1979_v54 = vpop.f32.mrf.mxu3 }
0x15aa   :  { %v1980_v60 = vadd.f32 %v2139_v52, %v1979_v54 }
0x15ac   :  { %v2013_v61 = vadd.f32 %v2007_v51, %v1980_v60 }
0x1605   :  { %v1982_v55 = vpop.f32.mrf.mxu3 }
0x1606   :  { %v1983_v56 = vadd.f32 %v2139_v52, %v1982_v55 }
0x1608   :  { %v2014_v58 = vadd.f32 %v2010_v42, %v1983_v56 }
0x160a   :  { %2016 = vrot.lane.b32.xlu0 %v2014_v58, %s2243_s26 }
0x167c   :  { %v2017_v62 = vpop.permute.xlu0 %2016 }
0x167d   :  { %v2020_v39 = vsel %vm2019_vm8, %v2013_v61, %v2017_v62 }
0x167e   :  { %2022 = vst.msk [vmem:[%s2884_s5] sm:$0xff] %vm2021_vm9, %v2020_v39 }

</bundles_post_ra>
